<compile_context>
chip_gen: v5e
topology: v5e:2x2
jax: 0.10.0
libtpu: 0.0.40
codegen_flags: <defaults>
</compile_context>

<pallas_src>
import math

import jax
import jax.numpy as jnp
from jax.experimental import pallas as pl
from jax.experimental.pallas import tpu as pltpu


# ----------------------------- model config (small, synthetic) -----------------------------
B = 2            # batch
S = 8            # sequence length
H = 32           # hidden size
NH = 4           # attention heads
HD = H // NH     # head dim
FF = 4 * H       # intermediate (FFN) size
V = 100          # vocab size
NTYPE = 2        # token-type vocab
L = 2            # number of encoder layers
LIN_H = 6        # classifier hidden (linear_layer_hidden_size in the PyTorch module)
N_LABEL = 3      # n_label
LN_EPS = 1e-12   # BERT layernorm eps
BS = B * S


# ----------------------------------- in-kernel helpers -----------------------------------
def _layer_norm(x, gamma, beta):
    mean = jnp.mean(x, axis=-1, keepdims=True)
    var = jnp.mean((x - mean) ** 2, axis=-1, keepdims=True)
    return (x - mean) * jax.lax.rsqrt(var + LN_EPS) * gamma + beta


# ----------------------------------- fused Pallas kernel -----------------------------------
def bert_fused_kernel(emb_ref, bias_ref, emb_g_ref, emb_b_ref,
                      wq_ref, bq_ref, wk_ref, bk_ref, wv_ref, bv_ref,
                      wo_ref, bo_ref, g1_ref, be1_ref,
                      w1_ref, b1_ref, w2_ref, b2_ref, g2_ref, be2_ref,
                      cw1_ref, cb1_ref, cw2_ref, cb2_ref,
                      logits_ref):
    # Embedding layernorm (activations stay (B*S, H) the whole way).
    x = _layer_norm(emb_ref[...], emb_g_ref[...], emb_b_ref[...])   # (BS, H)

    # Additive attention bias, precomputed once in the wrapper and reused by all
    # layers / heads: block-diagonal (batch separation) + key-padding mask.
    bias = bias_ref[...]                                            # (BS, BS)
    scale = 1.0 / math.sqrt(HD)

    for l in range(L):                                              # static unroll over layers
        wq = wq_ref[l]
        wk = wk_ref[l]
        wv = wv_ref[l]
        wo = wo_ref[l]

        q = jnp.dot(x, wq, preferred_element_type=jnp.float32) + bq_ref[l]
        k = jnp.dot(x, wk, preferred_element_type=jnp.float32) + bk_ref[l]
        v = jnp.dot(x, wv, preferred_element_type=jnp.float32) + bv_ref[l]

        # Heads as a leading batch dim: (NH, BS, HD).
        q3 = jnp.stack([q[:, h * HD:(h + 1) * HD] for h in range(NH)], axis=0)
        k3 = jnp.stack([k[:, h * HD:(h + 1) * HD] for h in range(NH)], axis=0)
        v3 = jnp.stack([v[:, h * HD:(h + 1) * HD] for h in range(NH)], axis=0)

        # One batched contraction for all heads (batch separation via additive mask).
        s = jnp.einsum("hqd,hkd->hqk", q3, k3,
                       preferred_element_type=jnp.float32) * scale   # (NH, BS, BS)
        s = s + bias
        s = s - jnp.max(s, axis=-1, keepdims=True)
        p = jnp.exp(s)
        p = p * pl.reciprocal(jnp.sum(p, axis=-1, keepdims=True), approx=True)
        ctx = jnp.einsum("hqk,hkd->hqd", p, v3,
                         preferred_element_type=jnp.float32)         # (NH, BS, HD)

        # Output projection: accumulate per-head through Wo row slices (MXU work,
        # avoids a lane concatenate of the heads).
        attn = bo_ref[l]
        for h in range(NH):
            attn = attn + jnp.dot(ctx[h], wo[h * HD:(h + 1) * HD, :],
                                  preferred_element_type=jnp.float32)

        x = _layer_norm(x + attn, g1_ref[l], be1_ref[l])

        ffn = jnp.dot(x, w1_ref[l], preferred_element_type=jnp.float32) + b1_ref[l]
        ffn = jax.nn.gelu(ffn)
        ffn = jnp.dot(ffn, w2_ref[l], preferred_element_type=jnp.float32) + b2_ref[l]
        x = _layer_norm(x + ffn, g2_ref[l], be2_ref[l])

    # Classifier head on the [CLS] token of each batch element (rows 0, S, 2S, ...).
    # Linear(H, 6) -> ReLU -> Dropout(eval, identity) -> Linear(6, n_label)
    cls_rows = jnp.concatenate([x[b * S:b * S + 1, :] for b in range(B)], axis=0)  # (B, H)
    h1 = jnp.dot(cls_rows, cw1_ref[...], preferred_element_type=jnp.float32) + cb1_ref[...]
    h1 = jnp.maximum(h1, 0.0)
    logits_ref[...] = (jnp.dot(h1, cw2_ref[...], preferred_element_type=jnp.float32)
                       + cb2_ref[...])


# ----------------------------------- parameter init -----------------------------------
def init_params(key):
    std = 0.02
    keys = iter(jax.random.split(key, 64))

    def normal(shape):
        return std * jax.random.normal(next(keys), shape, dtype=jnp.float32)

    return {
        "word_emb": normal((V, H)),
        "pos_emb": normal((S, H)),
        "type_emb": normal((NTYPE, H)),
        "emb_gamma": jnp.ones((1, H), jnp.float32),
        "emb_beta": jnp.zeros((1, H), jnp.float32),
        # per-layer weights stacked along a leading L axis (indexed statically in-kernel)
        "wq": normal((L, H, H)), "bq": jnp.zeros((L, 1, H), jnp.float32),
        "wk": normal((L, H, H)), "bk": jnp.zeros((L, 1, H), jnp.float32),
        "wv": normal((L, H, H)), "bv": jnp.zeros((L, 1, H), jnp.float32),
        "wo": normal((L, H, H)), "bo": jnp.zeros((L, 1, H), jnp.float32),
        "g1": jnp.ones((L, 1, H), jnp.float32), "be1": jnp.zeros((L, 1, H), jnp.float32),
        "w1": normal((L, H, FF)), "b1": jnp.zeros((L, 1, FF), jnp.float32),
        "w2": normal((L, FF, H)), "b2": jnp.zeros((L, 1, H), jnp.float32),
        "g2": jnp.ones((L, 1, H), jnp.float32), "be2": jnp.zeros((L, 1, H), jnp.float32),
        "cls_w1": normal((H, LIN_H)), "cls_b1": jnp.zeros((1, LIN_H), jnp.float32),
        "cls_w2": normal((LIN_H, N_LABEL)), "cls_b2": jnp.zeros((1, N_LABEL), jnp.float32),
    }


# ----------------------------------- forward pass -----------------------------------
@jax.jit
def bert_seq_forward(params, input_ids, attention_mask, token_type_ids):
    # Embedding gathers (glue); everything downstream runs in ONE fused Pallas kernel.
    pos_ids = jnp.arange(S, dtype=jnp.int32)
    emb = (jnp.take(params["word_emb"], input_ids, axis=0)
           + params["pos_emb"][pos_ids][None, :, :]
           + jnp.take(params["type_emb"], token_type_ids, axis=0))        # (B, S, H)
    emb = emb.reshape(BS, H)
    # TODO(synk): embedding / hidden / classifier dropout omitted (eval mode -> identity).

    # Hoisted additive mask, shared across layers and heads:
    #   -10000 for padded keys and for cross-batch (block-diagonal) pairs.
    att = attention_mask.astype(jnp.float32)                              # (B, S)
    key_bias = (1.0 - att).reshape(1, BS) * -10000.0                      # (1, BS)
    same_batch = jnp.repeat(jnp.repeat(jnp.eye(B, dtype=jnp.float32), S, axis=0),
                            S, axis=1)                                    # (BS, BS)
    bias = (1.0 - same_batch) * -10000.0 + key_bias                       # (BS, BS)

    n_in = 24
    logits = pl.pallas_call(
        bert_fused_kernel,
        out_shape=jax.ShapeDtypeStruct((B, N_LABEL), jnp.float32),
        in_specs=[pl.BlockSpec(memory_space=pltpu.MemorySpace.VMEM)] * n_in,
        out_specs=pl.BlockSpec(memory_space=pltpu.MemorySpace.VMEM),
    )(emb, bias,
      params["emb_gamma"], params["emb_beta"],
      params["wq"], params["bq"], params["wk"], params["bk"],
      params["wv"], params["bv"], params["wo"], params["bo"],
      params["g1"], params["be1"], params["w1"], params["b1"],
      params["w2"], params["b2"], params["g2"], params["be2"],
      params["cls_w1"], params["cls_b1"], params["cls_w2"], params["cls_b2"])
    return logits


# ----------------------------------- main -----------------------------------
if __name__ == "__main__":
    key = jax.random.PRNGKey(0)
    k_param, k_ids = jax.random.split(key)

    params = init_params(k_param)
    input_ids = jax.random.randint(k_ids, (B, S), 0, V, dtype=jnp.int32)
    token_type_ids = jnp.zeros((B, S), jnp.int32)
    attention_mask = jnp.ones((B, S), jnp.int32)
    attention_mask = attention_mask.at[1, -2:].set(0)   # some padding in batch item 1

    logits = bert_seq_forward(params, input_ids, attention_mask, token_type_ids)
    jax.block_until_ready(logits)
    assert logits.shape == (B, N_LABEL) and logits.dtype == jnp.float32
    assert bool(jnp.all(jnp.isfinite(logits)))
    print("KERNEL_OK")
</pallas_src>

<mosaic_0001>
module attributes {stable_mosaic.version = 11 : i64} {
  func.func @bert_fused_kernel(%arg0: memref<16x32xf32, #tpu.memory_space<vmem>>, %arg1: memref<16x16xf32, #tpu.memory_space<vmem>>, %arg2: memref<1x32xf32, #tpu.memory_space<vmem>>, %arg3: memref<1x32xf32, #tpu.memory_space<vmem>>, %arg4: memref<2x32x32xf32, #tpu.memory_space<vmem>>, %arg5: memref<2x1x32xf32, #tpu.memory_space<vmem>>, %arg6: memref<2x32x32xf32, #tpu.memory_space<vmem>>, %arg7: memref<2x1x32xf32, #tpu.memory_space<vmem>>, %arg8: memref<2x32x32xf32, #tpu.memory_space<vmem>>, %arg9: memref<2x1x32xf32, #tpu.memory_space<vmem>>, %arg10: memref<2x32x32xf32, #tpu.memory_space<vmem>>, %arg11: memref<2x1x32xf32, #tpu.memory_space<vmem>>, %arg12: memref<2x1x32xf32, #tpu.memory_space<vmem>>, %arg13: memref<2x1x32xf32, #tpu.memory_space<vmem>>, %arg14: memref<2x32x128xf32, #tpu.memory_space<vmem>>, %arg15: memref<2x1x128xf32, #tpu.memory_space<vmem>>, %arg16: memref<2x128x32xf32, #tpu.memory_space<vmem>>, %arg17: memref<2x1x32xf32, #tpu.memory_space<vmem>>, %arg18: memref<2x1x32xf32, #tpu.memory_space<vmem>>, %arg19: memref<2x1x32xf32, #tpu.memory_space<vmem>>, %arg20: memref<32x6xf32, #tpu.memory_space<vmem>>, %arg21: memref<1x6xf32, #tpu.memory_space<vmem>>, %arg22: memref<6x3xf32, #tpu.memory_space<vmem>>, %arg23: memref<1x3xf32, #tpu.memory_space<vmem>>, %arg24: memref<2x3xf32, #tpu.memory_space<vmem>>) attributes {dimension_semantics = [], scalar_prefetch = 0 : i64, scratch_operands = 0 : i64, tpu.core_type = #tpu.core_type<tc>} {
    %c0 = arith.constant 0 : index
    %c0_0 = arith.constant 0 : index
    %0 = vector.load %arg0[%c0, %c0_0] : memref<16x32xf32, #tpu.memory_space<vmem>>, vector<16x32xf32>
    %c0_1 = arith.constant 0 : index
    %c0_2 = arith.constant 0 : index
    %1 = vector.load %arg2[%c0_1, %c0_2] : memref<1x32xf32, #tpu.memory_space<vmem>>, vector<1x32xf32>
    %c0_3 = arith.constant 0 : index
    %c0_4 = arith.constant 0 : index
    %2 = vector.load %arg3[%c0_3, %c0_4] : memref<1x32xf32, #tpu.memory_space<vmem>>, vector<1x32xf32>
    %cst = arith.constant dense<0.000000e+00> : vector<16xf32>
    %3 = vector.multi_reduction <add>, %0, %cst [1] : vector<16x32xf32> to vector<16xf32>
    %4 = vector.shape_cast %3 : vector<16xf32> to vector<16x1xf32>
    %cst_5 = arith.constant 3.200000e+01 : f32
    %5 = vector.broadcast %cst_5 : f32 to vector<16x1xf32>
    %6 = arith.divf %4, %5 : vector<16x1xf32>
    %7 = vector.broadcast %6 : vector<16x1xf32> to vector<16x32xf32>
    %8 = arith.subf %0, %7 : vector<16x32xf32>
    %9 = arith.mulf %8, %8 : vector<16x32xf32>
    %cst_6 = arith.constant dense<0.000000e+00> : vector<16xf32>
    %10 = vector.multi_reduction <add>, %9, %cst_6 [1] : vector<16x32xf32> to vector<16xf32>
    %11 = vector.shape_cast %10 : vector<16xf32> to vector<16x1xf32>
    %cst_7 = arith.constant 3.200000e+01 : f32
    %12 = vector.broadcast %cst_7 : f32 to vector<16x1xf32>
    %13 = arith.divf %11, %12 : vector<16x1xf32>
    %14 = vector.broadcast %6 : vector<16x1xf32> to vector<16x32xf32>
    %15 = arith.subf %0, %14 : vector<16x32xf32>
    %cst_8 = arith.constant 9.99999996E-13 : f32
    %16 = vector.broadcast %cst_8 : f32 to vector<16x1xf32>
    %17 = arith.addf %13, %16 : vector<16x1xf32>
    %18 = math.rsqrt %17 : vector<16x1xf32>
    %19 = vector.broadcast %18 : vector<16x1xf32> to vector<16x32xf32>
    %20 = arith.mulf %15, %19 : vector<16x32xf32>
    %21 = vector.broadcast %1 : vector<1x32xf32> to vector<16x32xf32>
    %22 = arith.mulf %20, %21 : vector<16x32xf32>
    %23 = vector.broadcast %2 : vector<1x32xf32> to vector<16x32xf32>
    %24 = arith.addf %22, %23 : vector<16x32xf32>
    %c0_9 = arith.constant 0 : index
    %c0_10 = arith.constant 0 : index
    %25 = vector.load %arg1[%c0_9, %c0_10] : memref<16x16xf32, #tpu.memory_space<vmem>>, vector<16x16xf32>
    %c0_11 = arith.constant 0 : index
    %c0_12 = arith.constant 0 : index
    %c0_13 = arith.constant 0 : index
    %26 = vector.load %arg4[%c0_11, %c0_12, %c0_13] : memref<2x32x32xf32, #tpu.memory_space<vmem>>, vector<1x32x32xf32>
    %27 = vector.shape_cast %26 : vector<1x32x32xf32> to vector<32x32xf32>
    %c0_14 = arith.constant 0 : index
    %c0_15 = arith.constant 0 : index
    %c0_16 = arith.constant 0 : index
    %28 = vector.load %arg6[%c0_14, %c0_15, %c0_16] : memref<2x32x32xf32, #tpu.memory_space<vmem>>, vector<1x32x32xf32>
    %29 = vector.shape_cast %28 : vector<1x32x32xf32> to vector<32x32xf32>
    %c0_17 = arith.constant 0 : index
    %c0_18 = arith.constant 0 : index
    %c0_19 = arith.constant 0 : index
    %30 = vector.load %arg8[%c0_17, %c0_18, %c0_19] : memref<2x32x32xf32, #tpu.memory_space<vmem>>, vector<1x32x32xf32>
    %31 = vector.shape_cast %30 : vector<1x32x32xf32> to vector<32x32xf32>
    %c0_20 = arith.constant 0 : index
    %c0_21 = arith.constant 0 : index
    %c0_22 = arith.constant 0 : index
    %32 = vector.load %arg10[%c0_20, %c0_21, %c0_22] : memref<2x32x32xf32, #tpu.memory_space<vmem>>, vector<1x32x32xf32>
    %33 = vector.shape_cast %32 : vector<1x32x32xf32> to vector<32x32xf32>
    %cst_23 = arith.constant dense<0.000000e+00> : vector<16x32xf32>
    %34 = tpu.matmul %24, %27, %cst_23 {dimension_numbers = #tpu.dot_dimension_numbers<[1], [0], [0], [1], [0, 0, 1, 1], [], []>} : vector<16x32xf32>, vector<32x32xf32>, vector<16x32xf32> -> vector<16x32xf32>
    %c0_24 = arith.constant 0 : index
    %c0_25 = arith.constant 0 : index
    %c0_26 = arith.constant 0 : index
    %35 = vector.load %arg5[%c0_24, %c0_25, %c0_26] : memref<2x1x32xf32, #tpu.memory_space<vmem>>, vector<1x1x32xf32>
    %36 = vector.shape_cast %35 : vector<1x1x32xf32> to vector<1x32xf32>
    %37 = vector.broadcast %36 : vector<1x32xf32> to vector<16x32xf32>
    %38 = arith.addf %34, %37 : vector<16x32xf32>
    %cst_27 = arith.constant dense<0.000000e+00> : vector<16x32xf32>
    %39 = tpu.matmul %24, %29, %cst_27 {dimension_numbers = #tpu.dot_dimension_numbers<[1], [0], [0], [1], [0, 0, 1, 1], [], []>} : vector<16x32xf32>, vector<32x32xf32>, vector<16x32xf32> -> vector<16x32xf32>
    %c0_28 = arith.constant 0 : index
    %c0_29 = arith.constant 0 : index
    %c0_30 = arith.constant 0 : index
    %40 = vector.load %arg7[%c0_28, %c0_29, %c0_30] : memref<2x1x32xf32, #tpu.memory_space<vmem>>, vector<1x1x32xf32>
    %41 = vector.shape_cast %40 : vector<1x1x32xf32> to vector<1x32xf32>
    %42 = vector.broadcast %41 : vector<1x32xf32> to vector<16x32xf32>
    %43 = arith.addf %39, %42 : vector<16x32xf32>
    %cst_31 = arith.constant dense<0.000000e+00> : vector<16x32xf32>
    %44 = tpu.matmul %24, %31, %cst_31 {dimension_numbers = #tpu.dot_dimension_numbers<[1], [0], [0], [1], [0, 0, 1, 1], [], []>} : vector<16x32xf32>, vector<32x32xf32>, vector<16x32xf32> -> vector<16x32xf32>
    %c0_32 = arith.constant 0 : index
    %c0_33 = arith.constant 0 : index
    %c0_34 = arith.constant 0 : index
    %45 = vector.load %arg9[%c0_32, %c0_33, %c0_34] : memref<2x1x32xf32, #tpu.memory_space<vmem>>, vector<1x1x32xf32>
    %46 = vector.shape_cast %45 : vector<1x1x32xf32> to vector<1x32xf32>
    %47 = vector.broadcast %46 : vector<1x32xf32> to vector<16x32xf32>
    %48 = arith.addf %44, %47 : vector<16x32xf32>
    %49 = vector.extract_strided_slice %38 {offsets = [0, 0], sizes = [16, 8], strides = [1, 1]} : vector<16x32xf32> to vector<16x8xf32>
    %50 = vector.extract_strided_slice %38 {offsets = [0, 8], sizes = [16, 8], strides = [1, 1]} : vector<16x32xf32> to vector<16x8xf32>
    %51 = vector.extract_strided_slice %38 {offsets = [0, 16], sizes = [16, 8], strides = [1, 1]} : vector<16x32xf32> to vector<16x8xf32>
    %52 = vector.extract_strided_slice %38 {offsets = [0, 24], sizes = [16, 8], strides = [1, 1]} : vector<16x32xf32> to vector<16x8xf32>
    %53 = vector.shape_cast %49 : vector<16x8xf32> to vector<1x16x8xf32>
    %54 = vector.shape_cast %50 : vector<16x8xf32> to vector<1x16x8xf32>
    %55 = vector.shape_cast %51 : vector<16x8xf32> to vector<1x16x8xf32>
    %56 = vector.shape_cast %52 : vector<16x8xf32> to vector<1x16x8xf32>
    %57 = tpu.concatenate %53, %54, %55, %56 in 0 : vector<1x16x8xf32>, vector<1x16x8xf32>, vector<1x16x8xf32>, vector<1x16x8xf32> -> vector<4x16x8xf32>
    %58 = vector.extract_strided_slice %43 {offsets = [0, 0], sizes = [16, 8], strides = [1, 1]} : vector<16x32xf32> to vector<16x8xf32>
    %59 = vector.extract_strided_slice %43 {offsets = [0, 8], sizes = [16, 8], strides = [1, 1]} : vector<16x32xf32> to vector<16x8xf32>
    %60 = vector.extract_strided_slice %43 {offsets = [0, 16], sizes = [16, 8], strides = [1, 1]} : vector<16x32xf32> to vector<16x8xf32>
    %61 = vector.extract_strided_slice %43 {offsets = [0, 24], sizes = [16, 8], strides = [1, 1]} : vector<16x32xf32> to vector<16x8xf32>
    %62 = vector.shape_cast %58 : vector<16x8xf32> to vector<1x16x8xf32>
    %63 = vector.shape_cast %59 : vector<16x8xf32> to vector<1x16x8xf32>
    %64 = vector.shape_cast %60 : vector<16x8xf32> to vector<1x16x8xf32>
    %65 = vector.shape_cast %61 : vector<16x8xf32> to vector<1x16x8xf32>
    %66 = tpu.concatenate %62, %63, %64, %65 in 0 : vector<1x16x8xf32>, vector<1x16x8xf32>, vector<1x16x8xf32>, vector<1x16x8xf32> -> vector<4x16x8xf32>
    %67 = vector.extract_strided_slice %48 {offsets = [0, 0], sizes = [16, 8], strides = [1, 1]} : vector<16x32xf32> to vector<16x8xf32>
    %68 = vector.extract_strided_slice %48 {offsets = [0, 8], sizes = [16, 8], strides = [1, 1]} : vector<16x32xf32> to vector<16x8xf32>
    %69 = vector.extract_strided_slice %48 {offsets = [0, 16], sizes = [16, 8], strides = [1, 1]} : vector<16x32xf32> to vector<16x8xf32>
    %70 = vector.extract_strided_slice %48 {offsets = [0, 24], sizes = [16, 8], strides = [1, 1]} : vector<16x32xf32> to vector<16x8xf32>
    %71 = vector.shape_cast %67 : vector<16x8xf32> to vector<1x16x8xf32>
    %72 = vector.shape_cast %68 : vector<16x8xf32> to vector<1x16x8xf32>
    %73 = vector.shape_cast %69 : vector<16x8xf32> to vector<1x16x8xf32>
    %74 = vector.shape_cast %70 : vector<16x8xf32> to vector<1x16x8xf32>
    %75 = tpu.concatenate %71, %72, %73, %74 in 0 : vector<1x16x8xf32>, vector<1x16x8xf32>, vector<1x16x8xf32>, vector<1x16x8xf32> -> vector<4x16x8xf32>
    "tpu.trace_start"() <{level = 10 : i32, message = "hqd,hkd->hqk"}> : () -> ()
    %cst_35 = arith.constant dense<0.000000e+00> : vector<4x16x16xf32>
    %76 = tpu.matmul %57, %66, %cst_35 {dimension_numbers = #tpu.dot_dimension_numbers<[2], [2], [1], [1], [0, 0, 0, 1, 1, 1], [0], [0]>} : vector<4x16x8xf32>, vector<4x16x8xf32>, vector<4x16x16xf32> -> vector<4x16x16xf32>
    "tpu.trace_stop"() : () -> ()
    %cst_36 = arith.constant 0.353553385 : f32
    %77 = vector.broadcast %cst_36 : f32 to vector<4x16x16xf32>
    %78 = arith.mulf %76, %77 : vector<4x16x16xf32>
    %79 = vector.shape_cast %25 : vector<16x16xf32> to vector<1x16x16xf32>
    %80 = vector.broadcast %79 : vector<1x16x16xf32> to vector<4x16x16xf32>
    %81 = arith.addf %78, %80 : vector<4x16x16xf32>
    %cst_37 = arith.constant dense<0xFF800000> : vector<4x16xf32>
    %82 = vector.multi_reduction <maximumf>, %81, %cst_37 [2] : vector<4x16x16xf32> to vector<4x16xf32>
    %83 = vector.shape_cast %82 : vector<4x16xf32> to vector<4x16x1xf32>
    %84 = vector.broadcast %83 : vector<4x16x1xf32> to vector<4x16x16xf32>
    %85 = arith.subf %81, %84 : vector<4x16x16xf32>
    %86 = math.exp %85 : vector<4x16x16xf32>
    %cst_38 = arith.constant dense<0.000000e+00> : vector<4x16xf32>
    %87 = vector.multi_reduction <add>, %86, %cst_38 [2] : vector<4x16x16xf32> to vector<4x16xf32>
    %88 = vector.shape_cast %87 : vector<4x16xf32> to vector<4x16x1xf32>
    %89 = tpu.reciprocal %88 {approx = true} : vector<4x16x1xf32> -> vector<4x16x1xf32>
    %90 = vector.broadcast %89 : vector<4x16x1xf32> to vector<4x16x16xf32>
    %91 = arith.mulf %86, %90 : vector<4x16x16xf32>
    "tpu.trace_start"() <{level = 10 : i32, message = "hqk,hkd->hqd"}> : () -> ()
    %cst_39 = arith.constant dense<0.000000e+00> : vector<4x16x8xf32>
    %92 = tpu.matmul %91, %75, %cst_39 {dimension_numbers = #tpu.dot_dimension_numbers<[2], [1], [1], [2], [0, 0, 0, 1, 1, 2], [0], [0]>} : vector<4x16x16xf32>, vector<4x16x8xf32>, vector<4x16x8xf32> -> vector<4x16x8xf32>
    "tpu.trace_stop"() : () -> ()
    %c0_40 = arith.constant 0 : index
    %c0_41 = arith.constant 0 : index
    %c0_42 = arith.constant 0 : index
    %93 = vector.load %arg11[%c0_40, %c0_41, %c0_42] : memref<2x1x32xf32, #tpu.memory_space<vmem>>, vector<1x1x32xf32>
    %94 = vector.shape_cast %93 : vector<1x1x32xf32> to vector<1x32xf32>
    %95 = vector.extract_strided_slice %92 {offsets = [0, 0, 0], sizes = [1, 16, 8], strides = [1, 1, 1]} : vector<4x16x8xf32> to vector<1x16x8xf32>
    %96 = vector.shape_cast %95 : vector<1x16x8xf32> to vector<16x8xf32>
    %97 = vector.extract_strided_slice %33 {offsets = [0, 0], sizes = [8, 32], strides = [1, 1]} : vector<32x32xf32> to vector<8x32xf32>
    %cst_43 = arith.constant dense<0.000000e+00> : vector<16x32xf32>
    %98 = tpu.matmul %96, %97, %cst_43 {dimension_numbers = #tpu.dot_dimension_numbers<[1], [0], [0], [1], [0, 0, 1, 1], [], []>} : vector<16x8xf32>, vector<8x32xf32>, vector<16x32xf32> -> vector<16x32xf32>
    %99 = vector.broadcast %94 : vector<1x32xf32> to vector<16x32xf32>
    %100 = arith.addf %99, %98 : vector<16x32xf32>
    %101 = vector.extract_strided_slice %92 {offsets = [1, 0, 0], sizes = [1, 16, 8], strides = [1, 1, 1]} : vector<4x16x8xf32> to vector<1x16x8xf32>
    %102 = vector.shape_cast %101 : vector<1x16x8xf32> to vector<16x8xf32>
    %103 = vector.extract_strided_slice %33 {offsets = [8, 0], sizes = [8, 32], strides = [1, 1]} : vector<32x32xf32> to vector<8x32xf32>
    %cst_44 = arith.constant dense<0.000000e+00> : vector<16x32xf32>
    %104 = tpu.matmul %102, %103, %cst_44 {dimension_numbers = #tpu.dot_dimension_numbers<[1], [0], [0], [1], [0, 0, 1, 1], [], []>} : vector<16x8xf32>, vector<8x32xf32>, vector<16x32xf32> -> vector<16x32xf32>
    %105 = arith.addf %100, %104 : vector<16x32xf32>
    %106 = vector.extract_strided_slice %92 {offsets = [2, 0, 0], sizes = [1, 16, 8], strides = [1, 1, 1]} : vector<4x16x8xf32> to vector<1x16x8xf32>
    %107 = vector.shape_cast %106 : vector<1x16x8xf32> to vector<16x8xf32>
    %108 = vector.extract_strided_slice %33 {offsets = [16, 0], sizes = [8, 32], strides = [1, 1]} : vector<32x32xf32> to vector<8x32xf32>
    %cst_45 = arith.constant dense<0.000000e+00> : vector<16x32xf32>
    %109 = tpu.matmul %107, %108, %cst_45 {dimension_numbers = #tpu.dot_dimension_numbers<[1], [0], [0], [1], [0, 0, 1, 1], [], []>} : vector<16x8xf32>, vector<8x32xf32>, vector<16x32xf32> -> vector<16x32xf32>
    %110 = arith.addf %105, %109 : vector<16x32xf32>
    %111 = vector.extract_strided_slice %92 {offsets = [3, 0, 0], sizes = [1, 16, 8], strides = [1, 1, 1]} : vector<4x16x8xf32> to vector<1x16x8xf32>
    %112 = vector.shape_cast %111 : vector<1x16x8xf32> to vector<16x8xf32>
    %113 = vector.extract_strided_slice %33 {offsets = [24, 0], sizes = [8, 32], strides = [1, 1]} : vector<32x32xf32> to vector<8x32xf32>
    %cst_46 = arith.constant dense<0.000000e+00> : vector<16x32xf32>
    %114 = tpu.matmul %112, %113, %cst_46 {dimension_numbers = #tpu.dot_dimension_numbers<[1], [0], [0], [1], [0, 0, 1, 1], [], []>} : vector<16x8xf32>, vector<8x32xf32>, vector<16x32xf32> -> vector<16x32xf32>
    %115 = arith.addf %110, %114 : vector<16x32xf32>
    %116 = arith.addf %24, %115 : vector<16x32xf32>
    %c0_47 = arith.constant 0 : index
    %c0_48 = arith.constant 0 : index
    %c0_49 = arith.constant 0 : index
    %117 = vector.load %arg12[%c0_47, %c0_48, %c0_49] : memref<2x1x32xf32, #tpu.memory_space<vmem>>, vector<1x1x32xf32>
    %118 = vector.shape_cast %117 : vector<1x1x32xf32> to vector<1x32xf32>
    %c0_50 = arith.constant 0 : index
    %c0_51 = arith.constant 0 : index
    %c0_52 = arith.constant 0 : index
    %119 = vector.load %arg13[%c0_50, %c0_51, %c0_52] : memref<2x1x32xf32, #tpu.memory_space<vmem>>, vector<1x1x32xf32>
    %120 = vector.shape_cast %119 : vector<1x1x32xf32> to vector<1x32xf32>
    %cst_53 = arith.constant dense<0.000000e+00> : vector<16xf32>
    %121 = vector.multi_reduction <add>, %116, %cst_53 [1] : vector<16x32xf32> to vector<16xf32>
    %122 = vector.shape_cast %121 : vector<16xf32> to vector<16x1xf32>
    %cst_54 = arith.constant 3.200000e+01 : f32
    %123 = vector.broadcast %cst_54 : f32 to vector<16x1xf32>
    %124 = arith.divf %122, %123 : vector<16x1xf32>
    %125 = vector.broadcast %124 : vector<16x1xf32> to vector<16x32xf32>
    %126 = arith.subf %116, %125 : vector<16x32xf32>
    %127 = arith.mulf %126, %126 : vector<16x32xf32>
    %cst_55 = arith.constant dense<0.000000e+00> : vector<16xf32>
    %128 = vector.multi_reduction <add>, %127, %cst_55 [1] : vector<16x32xf32> to vector<16xf32>
    %129 = vector.shape_cast %128 : vector<16xf32> to vector<16x1xf32>
    %cst_56 = arith.constant 3.200000e+01 : f32
    %130 = vector.broadcast %cst_56 : f32 to vector<16x1xf32>
    %131 = arith.divf %129, %130 : vector<16x1xf32>
    %132 = vector.broadcast %124 : vector<16x1xf32> to vector<16x32xf32>
    %133 = arith.subf %116, %132 : vector<16x32xf32>
    %cst_57 = arith.constant 9.99999996E-13 : f32
    %134 = vector.broadcast %cst_57 : f32 to vector<16x1xf32>
    %135 = arith.addf %131, %134 : vector<16x1xf32>
    %136 = math.rsqrt %135 : vector<16x1xf32>
    %137 = vector.broadcast %136 : vector<16x1xf32> to vector<16x32xf32>
    %138 = arith.mulf %133, %137 : vector<16x32xf32>
    %139 = vector.broadcast %118 : vector<1x32xf32> to vector<16x32xf32>
    %140 = arith.mulf %138, %139 : vector<16x32xf32>
    %141 = vector.broadcast %120 : vector<1x32xf32> to vector<16x32xf32>
    %142 = arith.addf %140, %141 : vector<16x32xf32>
    %c0_58 = arith.constant 0 : index
    %c0_59 = arith.constant 0 : index
    %c0_60 = arith.constant 0 : index
    %143 = vector.load %arg14[%c0_58, %c0_59, %c0_60] : memref<2x32x128xf32, #tpu.memory_space<vmem>>, vector<1x32x128xf32>
    %144 = vector.shape_cast %143 : vector<1x32x128xf32> to vector<32x128xf32>
    %cst_61 = arith.constant dense<0.000000e+00> : vector<16x128xf32>
    %145 = tpu.matmul %142, %144, %cst_61 {dimension_numbers = #tpu.dot_dimension_numbers<[1], [0], [0], [1], [0, 0, 1, 1], [], []>} : vector<16x32xf32>, vector<32x128xf32>, vector<16x128xf32> -> vector<16x128xf32>
    %c0_62 = arith.constant 0 : index
    %c0_63 = arith.constant 0 : index
    %c0_64 = arith.constant 0 : index
    %146 = vector.load %arg15[%c0_62, %c0_63, %c0_64] : memref<2x1x128xf32, #tpu.memory_space<vmem>>, vector<1x1x128xf32>
    %147 = vector.shape_cast %146 : vector<1x1x128xf32> to vector<1x128xf32>
    %148 = vector.broadcast %147 : vector<1x128xf32> to vector<16x128xf32>
    %149 = arith.addf %145, %148 : vector<16x128xf32>
    %150 = arith.mulf %149, %149 : vector<16x128xf32>
    %151 = arith.mulf %149, %150 : vector<16x128xf32>
    %cst_65 = arith.constant 4.471500e-02 : f32
    %152 = vector.broadcast %cst_65 : f32 to vector<16x128xf32>
    %153 = arith.mulf %152, %151 : vector<16x128xf32>
    %154 = arith.addf %149, %153 : vector<16x128xf32>
    %cst_66 = arith.constant 0.797884583 : f32
    %155 = vector.broadcast %cst_66 : f32 to vector<16x128xf32>
    %156 = arith.mulf %155, %154 : vector<16x128xf32>
    %157 = math.tanh %156 : vector<16x128xf32>
    %cst_67 = arith.constant 1.000000e+00 : f32
    %158 = vector.broadcast %cst_67 : f32 to vector<16x128xf32>
    %159 = arith.addf %158, %157 : vector<16x128xf32>
    %cst_68 = arith.constant 5.000000e-01 : f32
    %160 = vector.broadcast %cst_68 : f32 to vector<16x128xf32>
    %161 = arith.mulf %160, %159 : vector<16x128xf32>
    %162 = arith.mulf %149, %161 : vector<16x128xf32>
    %c0_69 = arith.constant 0 : index
    %c0_70 = arith.constant 0 : index
    %c0_71 = arith.constant 0 : index
    %163 = vector.load %arg16[%c0_69, %c0_70, %c0_71] : memref<2x128x32xf32, #tpu.memory_space<vmem>>, vector<1x128x32xf32>
    %164 = vector.shape_cast %163 : vector<1x128x32xf32> to vector<128x32xf32>
    %cst_72 = arith.constant dense<0.000000e+00> : vector<16x32xf32>
    %165 = tpu.matmul %162, %164, %cst_72 {dimension_numbers = #tpu.dot_dimension_numbers<[1], [0], [0], [1], [0, 0, 1, 1], [], []>} : vector<16x128xf32>, vector<128x32xf32>, vector<16x32xf32> -> vector<16x32xf32>
    %c0_73 = arith.constant 0 : index
    %c0_74 = arith.constant 0 : index
    %c0_75 = arith.constant 0 : index
    %166 = vector.load %arg17[%c0_73, %c0_74, %c0_75] : memref<2x1x32xf32, #tpu.memory_space<vmem>>, vector<1x1x32xf32>
    %167 = vector.shape_cast %166 : vector<1x1x32xf32> to vector<1x32xf32>
    %168 = vector.broadcast %167 : vector<1x32xf32> to vector<16x32xf32>
    %169 = arith.addf %165, %168 : vector<16x32xf32>
    %170 = arith.addf %142, %169 : vector<16x32xf32>
    %c0_76 = arith.constant 0 : index
    %c0_77 = arith.constant 0 : index
    %c0_78 = arith.constant 0 : index
    %171 = vector.load %arg18[%c0_76, %c0_77, %c0_78] : memref<2x1x32xf32, #tpu.memory_space<vmem>>, vector<1x1x32xf32>
    %172 = vector.shape_cast %171 : vector<1x1x32xf32> to vector<1x32xf32>
    %c0_79 = arith.constant 0 : index
    %c0_80 = arith.constant 0 : index
    %c0_81 = arith.constant 0 : index
    %173 = vector.load %arg19[%c0_79, %c0_80, %c0_81] : memref<2x1x32xf32, #tpu.memory_space<vmem>>, vector<1x1x32xf32>
    %174 = vector.shape_cast %173 : vector<1x1x32xf32> to vector<1x32xf32>
    %cst_82 = arith.constant dense<0.000000e+00> : vector<16xf32>
    %175 = vector.multi_reduction <add>, %170, %cst_82 [1] : vector<16x32xf32> to vector<16xf32>
    %176 = vector.shape_cast %175 : vector<16xf32> to vector<16x1xf32>
    %cst_83 = arith.constant 3.200000e+01 : f32
    %177 = vector.broadcast %cst_83 : f32 to vector<16x1xf32>
    %178 = arith.divf %176, %177 : vector<16x1xf32>
    %179 = vector.broadcast %178 : vector<16x1xf32> to vector<16x32xf32>
    %180 = arith.subf %170, %179 : vector<16x32xf32>
    %181 = arith.mulf %180, %180 : vector<16x32xf32>
    %cst_84 = arith.constant dense<0.000000e+00> : vector<16xf32>
    %182 = vector.multi_reduction <add>, %181, %cst_84 [1] : vector<16x32xf32> to vector<16xf32>
    %183 = vector.shape_cast %182 : vector<16xf32> to vector<16x1xf32>
    %cst_85 = arith.constant 3.200000e+01 : f32
    %184 = vector.broadcast %cst_85 : f32 to vector<16x1xf32>
    %185 = arith.divf %183, %184 : vector<16x1xf32>
    %186 = vector.broadcast %178 : vector<16x1xf32> to vector<16x32xf32>
    %187 = arith.subf %170, %186 : vector<16x32xf32>
    %cst_86 = arith.constant 9.99999996E-13 : f32
    %188 = vector.broadcast %cst_86 : f32 to vector<16x1xf32>
    %189 = arith.addf %185, %188 : vector<16x1xf32>
    %190 = math.rsqrt %189 : vector<16x1xf32>
    %191 = vector.broadcast %190 : vector<16x1xf32> to vector<16x32xf32>
    %192 = arith.mulf %187, %191 : vector<16x32xf32>
    %193 = vector.broadcast %172 : vector<1x32xf32> to vector<16x32xf32>
    %194 = arith.mulf %192, %193 : vector<16x32xf32>
    %195 = vector.broadcast %174 : vector<1x32xf32> to vector<16x32xf32>
    %196 = arith.addf %194, %195 : vector<16x32xf32>
    %c1 = arith.constant 1 : index
    %c0_87 = arith.constant 0 : index
    %c0_88 = arith.constant 0 : index
    %197 = vector.load %arg4[%c1, %c0_87, %c0_88] : memref<2x32x32xf32, #tpu.memory_space<vmem>>, vector<1x32x32xf32>
    %198 = vector.shape_cast %197 : vector<1x32x32xf32> to vector<32x32xf32>
    %c1_89 = arith.constant 1 : index
    %c0_90 = arith.constant 0 : index
    %c0_91 = arith.constant 0 : index
    %199 = vector.load %arg6[%c1_89, %c0_90, %c0_91] : memref<2x32x32xf32, #tpu.memory_space<vmem>>, vector<1x32x32xf32>
    %200 = vector.shape_cast %199 : vector<1x32x32xf32> to vector<32x32xf32>
    %c1_92 = arith.constant 1 : index
    %c0_93 = arith.constant 0 : index
    %c0_94 = arith.constant 0 : index
    %201 = vector.load %arg8[%c1_92, %c0_93, %c0_94] : memref<2x32x32xf32, #tpu.memory_space<vmem>>, vector<1x32x32xf32>
    %202 = vector.shape_cast %201 : vector<1x32x32xf32> to vector<32x32xf32>
    %c1_95 = arith.constant 1 : index
    %c0_96 = arith.constant 0 : index
    %c0_97 = arith.constant 0 : index
    %203 = vector.load %arg10[%c1_95, %c0_96, %c0_97] : memref<2x32x32xf32, #tpu.memory_space<vmem>>, vector<1x32x32xf32>
    %204 = vector.shape_cast %203 : vector<1x32x32xf32> to vector<32x32xf32>
    %cst_98 = arith.constant dense<0.000000e+00> : vector<16x32xf32>
    %205 = tpu.matmul %196, %198, %cst_98 {dimension_numbers = #tpu.dot_dimension_numbers<[1], [0], [0], [1], [0, 0, 1, 1], [], []>} : vector<16x32xf32>, vector<32x32xf32>, vector<16x32xf32> -> vector<16x32xf32>
    %c1_99 = arith.constant 1 : index
    %c0_100 = arith.constant 0 : index
    %c0_101 = arith.constant 0 : index
    %206 = vector.load %arg5[%c1_99, %c0_100, %c0_101] : memref<2x1x32xf32, #tpu.memory_space<vmem>>, vector<1x1x32xf32>
    %207 = vector.shape_cast %206 : vector<1x1x32xf32> to vector<1x32xf32>
    %208 = vector.broadcast %207 : vector<1x32xf32> to vector<16x32xf32>
    %209 = arith.addf %205, %208 : vector<16x32xf32>
    %cst_102 = arith.constant dense<0.000000e+00> : vector<16x32xf32>
    %210 = tpu.matmul %196, %200, %cst_102 {dimension_numbers = #tpu.dot_dimension_numbers<[1], [0], [0], [1], [0, 0, 1, 1], [], []>} : vector<16x32xf32>, vector<32x32xf32>, vector<16x32xf32> -> vector<16x32xf32>
    %c1_103 = arith.constant 1 : index
    %c0_104 = arith.constant 0 : index
    %c0_105 = arith.constant 0 : index
    %211 = vector.load %arg7[%c1_103, %c0_104, %c0_105] : memref<2x1x32xf32, #tpu.memory_space<vmem>>, vector<1x1x32xf32>
    %212 = vector.shape_cast %211 : vector<1x1x32xf32> to vector<1x32xf32>
    %213 = vector.broadcast %212 : vector<1x32xf32> to vector<16x32xf32>
    %214 = arith.addf %210, %213 : vector<16x32xf32>
    %cst_106 = arith.constant dense<0.000000e+00> : vector<16x32xf32>
    %215 = tpu.matmul %196, %202, %cst_106 {dimension_numbers = #tpu.dot_dimension_numbers<[1], [0], [0], [1], [0, 0, 1, 1], [], []>} : vector<16x32xf32>, vector<32x32xf32>, vector<16x32xf32> -> vector<16x32xf32>
    %c1_107 = arith.constant 1 : index
    %c0_108 = arith.constant 0 : index
    %c0_109 = arith.constant 0 : index
    %216 = vector.load %arg9[%c1_107, %c0_108, %c0_109] : memref<2x1x32xf32, #tpu.memory_space<vmem>>, vector<1x1x32xf32>
    %217 = vector.shape_cast %216 : vector<1x1x32xf32> to vector<1x32xf32>
    %218 = vector.broadcast %217 : vector<1x32xf32> to vector<16x32xf32>
    %219 = arith.addf %215, %218 : vector<16x32xf32>
    %220 = vector.extract_strided_slice %209 {offsets = [0, 0], sizes = [16, 8], strides = [1, 1]} : vector<16x32xf32> to vector<16x8xf32>
    %221 = vector.extract_strided_slice %209 {offsets = [0, 8], sizes = [16, 8], strides = [1, 1]} : vector<16x32xf32> to vector<16x8xf32>
    %222 = vector.extract_strided_slice %209 {offsets = [0, 16], sizes = [16, 8], strides = [1, 1]} : vector<16x32xf32> to vector<16x8xf32>
    %223 = vector.extract_strided_slice %209 {offsets = [0, 24], sizes = [16, 8], strides = [1, 1]} : vector<16x32xf32> to vector<16x8xf32>
    %224 = vector.shape_cast %220 : vector<16x8xf32> to vector<1x16x8xf32>
    %225 = vector.shape_cast %221 : vector<16x8xf32> to vector<1x16x8xf32>
    %226 = vector.shape_cast %222 : vector<16x8xf32> to vector<1x16x8xf32>
    %227 = vector.shape_cast %223 : vector<16x8xf32> to vector<1x16x8xf32>
    %228 = tpu.concatenate %224, %225, %226, %227 in 0 : vector<1x16x8xf32>, vector<1x16x8xf32>, vector<1x16x8xf32>, vector<1x16x8xf32> -> vector<4x16x8xf32>
    %229 = vector.extract_strided_slice %214 {offsets = [0, 0], sizes = [16, 8], strides = [1, 1]} : vector<16x32xf32> to vector<16x8xf32>
    %230 = vector.extract_strided_slice %214 {offsets = [0, 8], sizes = [16, 8], strides = [1, 1]} : vector<16x32xf32> to vector<16x8xf32>
    %231 = vector.extract_strided_slice %214 {offsets = [0, 16], sizes = [16, 8], strides = [1, 1]} : vector<16x32xf32> to vector<16x8xf32>
    %232 = vector.extract_strided_slice %214 {offsets = [0, 24], sizes = [16, 8], strides = [1, 1]} : vector<16x32xf32> to vector<16x8xf32>
    %233 = vector.shape_cast %229 : vector<16x8xf32> to vector<1x16x8xf32>
    %234 = vector.shape_cast %230 : vector<16x8xf32> to vector<1x16x8xf32>
    %235 = vector.shape_cast %231 : vector<16x8xf32> to vector<1x16x8xf32>
    %236 = vector.shape_cast %232 : vector<16x8xf32> to vector<1x16x8xf32>
    %237 = tpu.concatenate %233, %234, %235, %236 in 0 : vector<1x16x8xf32>, vector<1x16x8xf32>, vector<1x16x8xf32>, vector<1x16x8xf32> -> vector<4x16x8xf32>
    %238 = vector.extract_strided_slice %219 {offsets = [0, 0], sizes = [16, 8], strides = [1, 1]} : vector<16x32xf32> to vector<16x8xf32>
    %239 = vector.extract_strided_slice %219 {offsets = [0, 8], sizes = [16, 8], strides = [1, 1]} : vector<16x32xf32> to vector<16x8xf32>
    %240 = vector.extract_strided_slice %219 {offsets = [0, 16], sizes = [16, 8], strides = [1, 1]} : vector<16x32xf32> to vector<16x8xf32>
    %241 = vector.extract_strided_slice %219 {offsets = [0, 24], sizes = [16, 8], strides = [1, 1]} : vector<16x32xf32> to vector<16x8xf32>
    %242 = vector.shape_cast %238 : vector<16x8xf32> to vector<1x16x8xf32>
    %243 = vector.shape_cast %239 : vector<16x8xf32> to vector<1x16x8xf32>
    %244 = vector.shape_cast %240 : vector<16x8xf32> to vector<1x16x8xf32>
    %245 = vector.shape_cast %241 : vector<16x8xf32> to vector<1x16x8xf32>
    %246 = tpu.concatenate %242, %243, %244, %245 in 0 : vector<1x16x8xf32>, vector<1x16x8xf32>, vector<1x16x8xf32>, vector<1x16x8xf32> -> vector<4x16x8xf32>
    "tpu.trace_start"() <{level = 10 : i32, message = "hqd,hkd->hqk"}> : () -> ()
    %cst_110 = arith.constant dense<0.000000e+00> : vector<4x16x16xf32>
    %247 = tpu.matmul %228, %237, %cst_110 {dimension_numbers = #tpu.dot_dimension_numbers<[2], [2], [1], [1], [0, 0, 0, 1, 1, 1], [0], [0]>} : vector<4x16x8xf32>, vector<4x16x8xf32>, vector<4x16x16xf32> -> vector<4x16x16xf32>
    "tpu.trace_stop"() : () -> ()
    %cst_111 = arith.constant 0.353553385 : f32
    %248 = vector.broadcast %cst_111 : f32 to vector<4x16x16xf32>
    %249 = arith.mulf %247, %248 : vector<4x16x16xf32>
    %250 = vector.shape_cast %25 : vector<16x16xf32> to vector<1x16x16xf32>
    %251 = vector.broadcast %250 : vector<1x16x16xf32> to vector<4x16x16xf32>
    %252 = arith.addf %249, %251 : vector<4x16x16xf32>
    %cst_112 = arith.constant dense<0xFF800000> : vector<4x16xf32>
    %253 = vector.multi_reduction <maximumf>, %252, %cst_112 [2] : vector<4x16x16xf32> to vector<4x16xf32>
    %254 = vector.shape_cast %253 : vector<4x16xf32> to vector<4x16x1xf32>
    %255 = vector.broadcast %254 : vector<4x16x1xf32> to vector<4x16x16xf32>
    %256 = arith.subf %252, %255 : vector<4x16x16xf32>
    %257 = math.exp %256 : vector<4x16x16xf32>
    %cst_113 = arith.constant dense<0.000000e+00> : vector<4x16xf32>
    %258 = vector.multi_reduction <add>, %257, %cst_113 [2] : vector<4x16x16xf32> to vector<4x16xf32>
    %259 = vector.shape_cast %258 : vector<4x16xf32> to vector<4x16x1xf32>
    %260 = tpu.reciprocal %259 {approx = true} : vector<4x16x1xf32> -> vector<4x16x1xf32>
    %261 = vector.broadcast %260 : vector<4x16x1xf32> to vector<4x16x16xf32>
    %262 = arith.mulf %257, %261 : vector<4x16x16xf32>
    "tpu.trace_start"() <{level = 10 : i32, message = "hqk,hkd->hqd"}> : () -> ()
    %cst_114 = arith.constant dense<0.000000e+00> : vector<4x16x8xf32>
    %263 = tpu.matmul %262, %246, %cst_114 {dimension_numbers = #tpu.dot_dimension_numbers<[2], [1], [1], [2], [0, 0, 0, 1, 1, 2], [0], [0]>} : vector<4x16x16xf32>, vector<4x16x8xf32>, vector<4x16x8xf32> -> vector<4x16x8xf32>
    "tpu.trace_stop"() : () -> ()
    %c1_115 = arith.constant 1 : index
    %c0_116 = arith.constant 0 : index
    %c0_117 = arith.constant 0 : index
    %264 = vector.load %arg11[%c1_115, %c0_116, %c0_117] : memref<2x1x32xf32, #tpu.memory_space<vmem>>, vector<1x1x32xf32>
    %265 = vector.shape_cast %264 : vector<1x1x32xf32> to vector<1x32xf32>
    %266 = vector.extract_strided_slice %263 {offsets = [0, 0, 0], sizes = [1, 16, 8], strides = [1, 1, 1]} : vector<4x16x8xf32> to vector<1x16x8xf32>
    %267 = vector.shape_cast %266 : vector<1x16x8xf32> to vector<16x8xf32>
    %268 = vector.extract_strided_slice %204 {offsets = [0, 0], sizes = [8, 32], strides = [1, 1]} : vector<32x32xf32> to vector<8x32xf32>
    %cst_118 = arith.constant dense<0.000000e+00> : vector<16x32xf32>
    %269 = tpu.matmul %267, %268, %cst_118 {dimension_numbers = #tpu.dot_dimension_numbers<[1], [0], [0], [1], [0, 0, 1, 1], [], []>} : vector<16x8xf32>, vector<8x32xf32>, vector<16x32xf32> -> vector<16x32xf32>
    %270 = vector.broadcast %265 : vector<1x32xf32> to vector<16x32xf32>
    %271 = arith.addf %270, %269 : vector<16x32xf32>
    %272 = vector.extract_strided_slice %263 {offsets = [1, 0, 0], sizes = [1, 16, 8], strides = [1, 1, 1]} : vector<4x16x8xf32> to vector<1x16x8xf32>
    %273 = vector.shape_cast %272 : vector<1x16x8xf32> to vector<16x8xf32>
    %274 = vector.extract_strided_slice %204 {offsets = [8, 0], sizes = [8, 32], strides = [1, 1]} : vector<32x32xf32> to vector<8x32xf32>
    %cst_119 = arith.constant dense<0.000000e+00> : vector<16x32xf32>
    %275 = tpu.matmul %273, %274, %cst_119 {dimension_numbers = #tpu.dot_dimension_numbers<[1], [0], [0], [1], [0, 0, 1, 1], [], []>} : vector<16x8xf32>, vector<8x32xf32>, vector<16x32xf32> -> vector<16x32xf32>
    %276 = arith.addf %271, %275 : vector<16x32xf32>
    %277 = vector.extract_strided_slice %263 {offsets = [2, 0, 0], sizes = [1, 16, 8], strides = [1, 1, 1]} : vector<4x16x8xf32> to vector<1x16x8xf32>
    %278 = vector.shape_cast %277 : vector<1x16x8xf32> to vector<16x8xf32>
    %279 = vector.extract_strided_slice %204 {offsets = [16, 0], sizes = [8, 32], strides = [1, 1]} : vector<32x32xf32> to vector<8x32xf32>
    %cst_120 = arith.constant dense<0.000000e+00> : vector<16x32xf32>
    %280 = tpu.matmul %278, %279, %cst_120 {dimension_numbers = #tpu.dot_dimension_numbers<[1], [0], [0], [1], [0, 0, 1, 1], [], []>} : vector<16x8xf32>, vector<8x32xf32>, vector<16x32xf32> -> vector<16x32xf32>
    %281 = arith.addf %276, %280 : vector<16x32xf32>
    %282 = vector.extract_strided_slice %263 {offsets = [3, 0, 0], sizes = [1, 16, 8], strides = [1, 1, 1]} : vector<4x16x8xf32> to vector<1x16x8xf32>
    %283 = vector.shape_cast %282 : vector<1x16x8xf32> to vector<16x8xf32>
    %284 = vector.extract_strided_slice %204 {offsets = [24, 0], sizes = [8, 32], strides = [1, 1]} : vector<32x32xf32> to vector<8x32xf32>
    %cst_121 = arith.constant dense<0.000000e+00> : vector<16x32xf32>
    %285 = tpu.matmul %283, %284, %cst_121 {dimension_numbers = #tpu.dot_dimension_numbers<[1], [0], [0], [1], [0, 0, 1, 1], [], []>} : vector<16x8xf32>, vector<8x32xf32>, vector<16x32xf32> -> vector<16x32xf32>
    %286 = arith.addf %281, %285 : vector<16x32xf32>
    %287 = arith.addf %196, %286 : vector<16x32xf32>
    %c1_122 = arith.constant 1 : index
    %c0_123 = arith.constant 0 : index
    %c0_124 = arith.constant 0 : index
    %288 = vector.load %arg12[%c1_122, %c0_123, %c0_124] : memref<2x1x32xf32, #tpu.memory_space<vmem>>, vector<1x1x32xf32>
    %289 = vector.shape_cast %288 : vector<1x1x32xf32> to vector<1x32xf32>
    %c1_125 = arith.constant 1 : index
    %c0_126 = arith.constant 0 : index
    %c0_127 = arith.constant 0 : index
    %290 = vector.load %arg13[%c1_125, %c0_126, %c0_127] : memref<2x1x32xf32, #tpu.memory_space<vmem>>, vector<1x1x32xf32>
    %291 = vector.shape_cast %290 : vector<1x1x32xf32> to vector<1x32xf32>
    %cst_128 = arith.constant dense<0.000000e+00> : vector<16xf32>
    %292 = vector.multi_reduction <add>, %287, %cst_128 [1] : vector<16x32xf32> to vector<16xf32>
    %293 = vector.shape_cast %292 : vector<16xf32> to vector<16x1xf32>
    %cst_129 = arith.constant 3.200000e+01 : f32
    %294 = vector.broadcast %cst_129 : f32 to vector<16x1xf32>
    %295 = arith.divf %293, %294 : vector<16x1xf32>
    %296 = vector.broadcast %295 : vector<16x1xf32> to vector<16x32xf32>
    %297 = arith.subf %287, %296 : vector<16x32xf32>
    %298 = arith.mulf %297, %297 : vector<16x32xf32>
    %cst_130 = arith.constant dense<0.000000e+00> : vector<16xf32>
    %299 = vector.multi_reduction <add>, %298, %cst_130 [1] : vector<16x32xf32> to vector<16xf32>
    %300 = vector.shape_cast %299 : vector<16xf32> to vector<16x1xf32>
    %cst_131 = arith.constant 3.200000e+01 : f32
    %301 = vector.broadcast %cst_131 : f32 to vector<16x1xf32>
    %302 = arith.divf %300, %301 : vector<16x1xf32>
    %303 = vector.broadcast %295 : vector<16x1xf32> to vector<16x32xf32>
    %304 = arith.subf %287, %303 : vector<16x32xf32>
    %cst_132 = arith.constant 9.99999996E-13 : f32
    %305 = vector.broadcast %cst_132 : f32 to vector<16x1xf32>
    %306 = arith.addf %302, %305 : vector<16x1xf32>
    %307 = math.rsqrt %306 : vector<16x1xf32>
    %308 = vector.broadcast %307 : vector<16x1xf32> to vector<16x32xf32>
    %309 = arith.mulf %304, %308 : vector<16x32xf32>
    %310 = vector.broadcast %289 : vector<1x32xf32> to vector<16x32xf32>
    %311 = arith.mulf %309, %310 : vector<16x32xf32>
    %312 = vector.broadcast %291 : vector<1x32xf32> to vector<16x32xf32>
    %313 = arith.addf %311, %312 : vector<16x32xf32>
    %c1_133 = arith.constant 1 : index
    %c0_134 = arith.constant 0 : index
    %c0_135 = arith.constant 0 : index
    %314 = vector.load %arg14[%c1_133, %c0_134, %c0_135] : memref<2x32x128xf32, #tpu.memory_space<vmem>>, vector<1x32x128xf32>
    %315 = vector.shape_cast %314 : vector<1x32x128xf32> to vector<32x128xf32>
    %cst_136 = arith.constant dense<0.000000e+00> : vector<16x128xf32>
    %316 = tpu.matmul %313, %315, %cst_136 {dimension_numbers = #tpu.dot_dimension_numbers<[1], [0], [0], [1], [0, 0, 1, 1], [], []>} : vector<16x32xf32>, vector<32x128xf32>, vector<16x128xf32> -> vector<16x128xf32>
    %c1_137 = arith.constant 1 : index
    %c0_138 = arith.constant 0 : index
    %c0_139 = arith.constant 0 : index
    %317 = vector.load %arg15[%c1_137, %c0_138, %c0_139] : memref<2x1x128xf32, #tpu.memory_space<vmem>>, vector<1x1x128xf32>
    %318 = vector.shape_cast %317 : vector<1x1x128xf32> to vector<1x128xf32>
    %319 = vector.broadcast %318 : vector<1x128xf32> to vector<16x128xf32>
    %320 = arith.addf %316, %319 : vector<16x128xf32>
    %321 = arith.mulf %320, %320 : vector<16x128xf32>
    %322 = arith.mulf %320, %321 : vector<16x128xf32>
    %cst_140 = arith.constant 4.471500e-02 : f32
    %323 = vector.broadcast %cst_140 : f32 to vector<16x128xf32>
    %324 = arith.mulf %323, %322 : vector<16x128xf32>
    %325 = arith.addf %320, %324 : vector<16x128xf32>
    %cst_141 = arith.constant 0.797884583 : f32
    %326 = vector.broadcast %cst_141 : f32 to vector<16x128xf32>
    %327 = arith.mulf %326, %325 : vector<16x128xf32>
    %328 = math.tanh %327 : vector<16x128xf32>
    %cst_142 = arith.constant 1.000000e+00 : f32
    %329 = vector.broadcast %cst_142 : f32 to vector<16x128xf32>
    %330 = arith.addf %329, %328 : vector<16x128xf32>
    %cst_143 = arith.constant 5.000000e-01 : f32
    %331 = vector.broadcast %cst_143 : f32 to vector<16x128xf32>
    %332 = arith.mulf %331, %330 : vector<16x128xf32>
    %333 = arith.mulf %320, %332 : vector<16x128xf32>
    %c1_144 = arith.constant 1 : index
    %c0_145 = arith.constant 0 : index
    %c0_146 = arith.constant 0 : index
    %334 = vector.load %arg16[%c1_144, %c0_145, %c0_146] : memref<2x128x32xf32, #tpu.memory_space<vmem>>, vector<1x128x32xf32>
    %335 = vector.shape_cast %334 : vector<1x128x32xf32> to vector<128x32xf32>
    %cst_147 = arith.constant dense<0.000000e+00> : vector<16x32xf32>
    %336 = tpu.matmul %333, %335, %cst_147 {dimension_numbers = #tpu.dot_dimension_numbers<[1], [0], [0], [1], [0, 0, 1, 1], [], []>} : vector<16x128xf32>, vector<128x32xf32>, vector<16x32xf32> -> vector<16x32xf32>
    %c1_148 = arith.constant 1 : index
    %c0_149 = arith.constant 0 : index
    %c0_150 = arith.constant 0 : index
    %337 = vector.load %arg17[%c1_148, %c0_149, %c0_150] : memref<2x1x32xf32, #tpu.memory_space<vmem>>, vector<1x1x32xf32>
    %338 = vector.shape_cast %337 : vector<1x1x32xf32> to vector<1x32xf32>
    %339 = vector.broadcast %338 : vector<1x32xf32> to vector<16x32xf32>
    %340 = arith.addf %336, %339 : vector<16x32xf32>
    %341 = arith.addf %313, %340 : vector<16x32xf32>
    %c1_151 = arith.constant 1 : index
    %c0_152 = arith.constant 0 : index
    %c0_153 = arith.constant 0 : index
    %342 = vector.load %arg18[%c1_151, %c0_152, %c0_153] : memref<2x1x32xf32, #tpu.memory_space<vmem>>, vector<1x1x32xf32>
    %343 = vector.shape_cast %342 : vector<1x1x32xf32> to vector<1x32xf32>
    %c1_154 = arith.constant 1 : index
    %c0_155 = arith.constant 0 : index
    %c0_156 = arith.constant 0 : index
    %344 = vector.load %arg19[%c1_154, %c0_155, %c0_156] : memref<2x1x32xf32, #tpu.memory_space<vmem>>, vector<1x1x32xf32>
    %345 = vector.shape_cast %344 : vector<1x1x32xf32> to vector<1x32xf32>
    %cst_157 = arith.constant dense<0.000000e+00> : vector<16xf32>
    %346 = vector.multi_reduction <add>, %341, %cst_157 [1] : vector<16x32xf32> to vector<16xf32>
    %347 = vector.shape_cast %346 : vector<16xf32> to vector<16x1xf32>
    %cst_158 = arith.constant 3.200000e+01 : f32
    %348 = vector.broadcast %cst_158 : f32 to vector<16x1xf32>
    %349 = arith.divf %347, %348 : vector<16x1xf32>
    %350 = vector.broadcast %349 : vector<16x1xf32> to vector<16x32xf32>
    %351 = arith.subf %341, %350 : vector<16x32xf32>
    %352 = arith.mulf %351, %351 : vector<16x32xf32>
    %cst_159 = arith.constant dense<0.000000e+00> : vector<16xf32>
    %353 = vector.multi_reduction <add>, %352, %cst_159 [1] : vector<16x32xf32> to vector<16xf32>
    %354 = vector.shape_cast %353 : vector<16xf32> to vector<16x1xf32>
    %cst_160 = arith.constant 3.200000e+01 : f32
    %355 = vector.broadcast %cst_160 : f32 to vector<16x1xf32>
    %356 = arith.divf %354, %355 : vector<16x1xf32>
    %357 = vector.broadcast %349 : vector<16x1xf32> to vector<16x32xf32>
    %358 = arith.subf %341, %357 : vector<16x32xf32>
    %cst_161 = arith.constant 9.99999996E-13 : f32
    %359 = vector.broadcast %cst_161 : f32 to vector<16x1xf32>
    %360 = arith.addf %356, %359 : vector<16x1xf32>
    %361 = math.rsqrt %360 : vector<16x1xf32>
    %362 = vector.broadcast %361 : vector<16x1xf32> to vector<16x32xf32>
    %363 = arith.mulf %358, %362 : vector<16x32xf32>
    %364 = vector.broadcast %343 : vector<1x32xf32> to vector<16x32xf32>
    %365 = arith.mulf %363, %364 : vector<16x32xf32>
    %366 = vector.broadcast %345 : vector<1x32xf32> to vector<16x32xf32>
    %367 = arith.addf %365, %366 : vector<16x32xf32>
    %368 = vector.extract_strided_slice %367 {offsets = [0, 0], sizes = [1, 32], strides = [1, 1]} : vector<16x32xf32> to vector<1x32xf32>
    %369 = vector.extract_strided_slice %367 {offsets = [8, 0], sizes = [1, 32], strides = [1, 1]} : vector<16x32xf32> to vector<1x32xf32>
    %370 = tpu.concatenate %368, %369 in 0 : vector<1x32xf32>, vector<1x32xf32> -> vector<2x32xf32>
    %c0_162 = arith.constant 0 : index
    %c0_163 = arith.constant 0 : index
    %371 = vector.load %arg20[%c0_162, %c0_163] : memref<32x6xf32, #tpu.memory_space<vmem>>, vector<32x6xf32>
    %cst_164 = arith.constant dense<0.000000e+00> : vector<2x6xf32>
    %372 = tpu.matmul %370, %371, %cst_164 {dimension_numbers = #tpu.dot_dimension_numbers<[1], [0], [0], [1], [0, 0, 1, 1], [], []>} : vector<2x32xf32>, vector<32x6xf32>, vector<2x6xf32> -> vector<2x6xf32>
    %c0_165 = arith.constant 0 : index
    %c0_166 = arith.constant 0 : index
    %373 = vector.load %arg21[%c0_165, %c0_166] : memref<1x6xf32, #tpu.memory_space<vmem>>, vector<1x6xf32>
    %374 = vector.broadcast %373 : vector<1x6xf32> to vector<2x6xf32>
    %375 = arith.addf %372, %374 : vector<2x6xf32>
    %cst_167 = arith.constant 0.000000e+00 : f32
    %376 = vector.broadcast %cst_167 : f32 to vector<2x6xf32>
    %377 = arith.maximumf %375, %376 : vector<2x6xf32>
    %c0_168 = arith.constant 0 : index
    %c0_169 = arith.constant 0 : index
    %378 = vector.load %arg22[%c0_168, %c0_169] : memref<6x3xf32, #tpu.memory_space<vmem>>, vector<6x3xf32>
    %cst_170 = arith.constant dense<0.000000e+00> : vector<2x3xf32>
    %379 = tpu.matmul %377, %378, %cst_170 {dimension_numbers = #tpu.dot_dimension_numbers<[1], [0], [0], [1], [0, 0, 1, 1], [], []>} : vector<2x6xf32>, vector<6x3xf32>, vector<2x3xf32> -> vector<2x3xf32>
    %c0_171 = arith.constant 0 : index
    %c0_172 = arith.constant 0 : index
    %380 = vector.load %arg23[%c0_171, %c0_172] : memref<1x3xf32, #tpu.memory_space<vmem>>, vector<1x3xf32>
    %381 = vector.broadcast %380 : vector<1x3xf32> to vector<2x3xf32>
    %382 = arith.addf %379, %381 : vector<2x3xf32>
    %c0_173 = arith.constant 0 : index
    %c0_174 = arith.constant 0 : index
    %383 = vector.load %arg24[%c0_173, %c0_174] : memref<2x3xf32, #tpu.memory_space<vmem>>, vector<2x3xf32>
    tpu.vector_store %arg24[%c0_173, %c0_174], %382 {strides = array<i32>} : memref<2x3xf32, #tpu.memory_space<vmem>>, vector<2x3xf32>,
    return
  }
}

</mosaic_0001>

<bundles_post_ra>
// kernel: bert_seq_forward.1
= control target key start
LH: loop header
LB: loop body
LE: loop exit
PB: predicated region body
PF: predicated region fallthrough
CT: control target
= control target key end

     0   :  { %s2967_s0 = inlined_call_operand.vmem [shape: f32[16,32], index: 0, kind: input, shape index: {}]   ;;  %s2968_s1 = inlined_call_operand.vmem [shape: f32[16,16], index: 1, kind: input, shape index: {}]   ;;  %s2969_s2 = inlined_call_operand.vmem [shape: f32[1,32], index: 2, kind: input, shape index: {}]   ;;  %s2970_s3 = inlined_call_operand.vmem [shape: f32[1,32], index: 3, kind: input, shape index: {}]   ;;  %s2971_s4 = inlined_call_operand.vmem [shape: f32[2,32,32], index: 4, kind: input, shape index: {}]   ;;  %s2972_s5 = inlined_call_operand.vmem [shape: f32[2,1,32], index: 5, kind: input, shape index: {}]   ;;  %s2973_s6 = inlined_call_operand.vmem [shape: f32[2,32,32], index: 6, kind: input, shape index: {}]   ;;  %s2974_s7 = inlined_call_operand.vmem [shape: f32[2,1,32], index: 7, kind: input, shape index: {}]   ;;  %s2975_s8 = inlined_call_operand.vmem [shape: f32[2,32,32], index: 8, kind: input, shape index: {}]   ;;  %s2976_s9 = inlined_call_operand.vmem [shape: f32[2,1,32], index: 9, kind: input, shape index: {}]   ;;  %s2977_s10 = inlined_call_operand.vmem [shape: f32[2,32,32], index: 10, kind: input, shape index: {}]   ;;  %s2978_s11 = inlined_call_operand.vmem [shape: f32[2,1,32], index: 11, kind: input, shape index: {}]   ;;  %s2979_s12 = inlined_call_operand.vmem [shape: f32[2,1,32], index: 12, kind: input, shape index: {}]   ;;  %s2980_s13 = inlined_call_operand.vmem [shape: f32[2,1,32], index: 13, kind: input, shape index: {}]   ;;  %s2981_s14 = inlined_call_operand.vmem [shape: f32[2,32,128], index: 14, kind: input, shape index: {}]   ;;  %s2982_s15 = inlined_call_operand.vmem [shape: f32[2,1,128], index: 15, kind: input, shape index: {}]   ;;  %s2983_s16 = inlined_call_operand.vmem [shape: f32[2,128,32], index: 16, kind: input, shape index: {}]   ;;  %s2984_s17 = inlined_call_operand.vmem [shape: f32[2,1,32], index: 17, kind: input, shape index: {}]   ;;  %s2985_s18 = inlined_call_operand.vmem [shape: f32[2,1,32], index: 18, kind: input, shape index: {}]   ;;  %s2986_s19 = inlined_call_operand.vmem [shape: f32[2,1,32], index: 19, kind: input, shape index: {}]   ;;  %s2987_s20 = inlined_call_operand.vmem [shape: f32[32,6], index: 20, kind: input, shape index: {}]   ;;  %s2988_s21 = inlined_call_operand.vmem [shape: f32[1,6], index: 21, kind: input, shape index: {}]   ;;  %s2989_s22 = inlined_call_operand.vmem [shape: f32[6,3], index: 22, kind: input, shape index: {}]   ;;  %s2990_s23 = inlined_call_operand.vmem [shape: f32[1,3], index: 23, kind: input, shape index: {}]   ;;  %s2991_s24 = inlined_call_operand.hbm [shape: f32[2,3], index: 24, kind: output, shape index: {}]  }
   0x1   :  { %3005 = sst [smem:[#allocation5_spill]] %s2967_s0 }
   0x2   :  { %3006 = sst [smem:[#allocation6_spill]] %s2968_s1 }
   0x3   :  { %3007 = sst [smem:[#allocation7_spill]] %s2969_s2 }
   0x4   :  { %3008 = sst [smem:[#allocation8_spill]] %s2970_s3 }
   0x5   :  { %3009 = sst [smem:[#allocation9_spill]] %s2971_s4 }
   0x6   :  { %3010 = sst [smem:[#allocation10_spill]] %s2972_s5 }
   0x7   :  { %3011 = sst [smem:[#allocation11_spill]] %s2973_s6 }
   0x8   :  { %3012 = sst [smem:[#allocation12_spill]] %s2974_s7 }
   0x9   :  { %3013 = sst [smem:[#allocation13_spill]] %s2975_s8 }
   0xa   :  { %s3014_s27 = sld [smem:[#allocation5_spill]]  ;;  %vm82_vm0 = vcmask 261120  }
  0x10   :  { %v78_v0 = vld [vmem:[%s3014_s27] sm:$0xff]  ;;  %v79_v1 = vld [vmem:[%s3014_s27 + $0x8] sm:$0xff] }
  0x11   :  { %v83_v2 = vsel %vm82_vm0, %v78_v0, 0.0  ;;  %v86_v3 = vsel %vm82_vm0, %v79_v1, 0.0 }
  0x12   :  { %84 = vadd.xlane.f32.xlu0 %v83_v2 }
  0x13   :  { %29 = vsyncpa [#allocation3], 0  ;;  %v2238_v4 = vmov 32.0   ;;  %s3015_s0 = sld [smem:[#allocation9_spill]]  ;;  %s2999_s6 = smov 104   ;;  %vm297_vm8 = vcmask 64512  }
  0x14   :  { %2118 = vrcp.f32 %v2238_v4  ;;  %s3016_s3 = sld [smem:[#allocation11_spill]]  ;;  %s3003_s2 = smov 112   ;;  %vm438_vm9 = vcmask 130048  }
  0x15   :  { %s3017_s8 = sld [smem:[#allocation13_spill]] }
  0x16   :  { %s3018_s29 = sld [smem:[#allocation7_spill]] }
  0x17   :  { %s3019_s25 = sld [smem:[#allocation8_spill]] }
  0x18   :  { %s3020_s5 = sld [smem:[#allocation10_spill]] }
  0x19   :  { %v149_v21 = vld [vmem:[%s3015_s0 + $0x18] sm:$0xff]  ;;  %v148_v23 = vld [vmem:[%s3015_s0 + $0x10] sm:$0xff]  ;;  %v147_v25 = vld [vmem:[%s3015_s0 + $0x8] sm:$0xff]  ;;  %s3021_s28 = sld [smem:[#allocation12_spill]] }
  0x1a   :  { %87 = vadd.xlane.f32.xlu0 %v86_v3  ;;  %v2119_v5 = vpop.eup %2118  ;;  %v153_v22 = vld [vmem:[%s3016_s3 + $0x18] sm:$0xff]  ;;  %184 = vmatpush.msra.mxu0 %v149_v21  ;;  %v152_v24 = vld [vmem:[%s3016_s3 + $0x10] sm:$0xff]  ;;  %v151_v26 = vld [vmem:[%s3016_s3 + $0x8] sm:$0xff]  ;;  %s3022_s1 = sld [smem:[#allocation6_spill]] }
  0x1b   :  { %v90_v6 = vmul.f32 32.0, %v2119_v5  ;;  %vm94_vm1 = vweird.f32 %v2119_v5  ;;  %211 = vmatpush.msra.mxu1 %v153_v22  ;;  %v146_v27 = vld [vmem:[%s3015_s0] sm:$0xff]  ;;  %v157_v29 = vld [vmem:[%s3017_s8 + $0x18] sm:$0xff]  ;;  %v156_v30 = vld [vmem:[%s3017_s8 + $0x10] sm:$0xff] }
  0x1c   :  { %185 = vmatpush.msra.mxu0 %v148_v23  ;;  %v150_v28 = vld [vmem:[%s3016_s3] sm:$0xff]  ;;  %2055 = vmatpush.msra.mxu2 %v157_v29  ;;  %v155_v31 = vld [vmem:[%s3017_s8 + $0x8] sm:$0xff] }
  0x1d   :  { %v91_v7 = vsub.f32 1.0, %v90_v6  ;;  %212 = vmatpush.msra.mxu1 %v152_v24  ;;  %v154_v34 = vld [vmem:[%s3017_s8] sm:$0xff] }
  0x1e   :  { %186 = vmatpush.msra.mxu0 %v147_v25  ;;  %2056 = vmatpush.msra.mxu2 %v156_v30  ;;  %v2094_v47 = vld [vmem:[%s3018_s29] ss:$0 sm:$0xff]  ;;  %s3001_s29 = smov 120  }
  0x1f   :  { %v92_v8 = vmul.f32 %v2119_v5, %v91_v7  ;;  %213 = vmatpush.msra.mxu1 %v151_v26  ;;  %v2095_v51 = vld [vmem:[%s3019_s25] ss:$0 sm:$0xff] }
  0x20   :  { %187 = vmatpush.msra.mxu0 %v146_v27  ;;  %2057 = vmatpush.msra.mxu2 %v155_v31  ;;  %v2096_v61 = vld [vmem:[%s3020_s5] ss:$0 sm:$0xff] }
  0x21   :  { %v93_v9 = vadd.f32 %v2119_v5, %v92_v8  ;;  %214 = vmatpush.msra.mxu1 %v150_v28  ;;  %v2097_v62 = vld [vmem:[%s3021_s28] ss:$0 sm:$0xff] }
  0x22   :  { %238 = vmatpush.msrb.mxu0 %v157_v29  ;;  %2058 = vmatpush.msra.mxu2 %v154_v34  ;;  %v2098_v6 = vld [vmem:[%s2976_s9] ss:$0 sm:$0xff] }
  0x23   :  { %v2376_v10 = vsel %vm94_vm1, %v2119_v5, %v93_v9  ;;  %v2489_v27 = vld [vmem:[%s3022_s1] sm:$0xff] }
  0x24   :  { %239 = vmatpush.msrb.mxu0 %v156_v30 }
  0x26   :  { %240 = vmatpush.msrb.mxu0 %v155_v31 }
  0x28   :  { %241 = vmatpush.msrb.mxu0 %v154_v34 }
  0x85   :  { %v85_v11 = vpop.xlane.xlu0 %84 }
  0x86   :  { %v96_v12 = vmul.f32 %v2376_v10, %v85_v11 }
  0x88   :  { %v98_v13 = vsub.f32 %v78_v0, %v96_v12 }
  0x8a   :  { %v100_v14 = vmul.f32 %v98_v13, %v98_v13 }
  0x8c   :  { %v102_v15 = vsel %vm82_vm0, %v100_v14, 0.0 }
  0x8d   :  { %103 = vadd.xlane.f32.xlu1 %v102_v15  ;;  %v88_v16 = vpop.xlane.xlu0 %87 }
  0x8e   :  { %v97_v17 = vmul.f32 %v2376_v10, %v88_v16 }
  0x90   :  { %v2381_v18 = vsub.f32 %v79_v1, %v97_v17 }
  0x92   :  { %v101_v19 = vmul.f32 %v2381_v18, %v2381_v18 }
  0x94   :  { %v105_v20 = vsel %vm82_vm0, %v101_v19, 0.0 }
  0x95   :  { %106 = vadd.xlane.f32.xlu1 %v105_v20 }
 0x100   :  { %v104_v32 = vpop.xlane.xlu1 %103 }
 0x101   :  { %v108_v33 = vmul.f32 %v104_v32, %v2376_v10  ;;  %v2496_v32 = vld [vmem:[%s3022_s1 + $0x8] sm:$0xff]  ;;  %s3023_s1 = smov 112  }
 0x103   :  { %v110_v35 = vadd.f32 1e-12, %v108_v33 }
 0x105   :  { %2120 = vrsqrt.f32 %v110_v35  ;;  %vm118_vm3 = vweird.f32 %v110_v35 }
 0x108   :  { %v107_v36 = vpop.xlane.xlu1 %106 }
 0x109   :  { %v109_v37 = vmul.f32 %v107_v36, %v2376_v10 }
 0x10b   :  { %v2121_v38 = vpop.eup %2120  ;;  %v111_v39 = vadd.f32 1e-12, %v109_v37 }
 0x10c   :  { %v113_v40 = vmul.f32 %v2121_v38, %v110_v35  ;;  %vm119_vm2 = vweird.f32 %v2121_v38 }
 0x10d   :  { %2122 = vrsqrt.f32 %v111_v39  ;;  %vm120_vm4 = vmor %vm118_vm3, %vm119_vm2  ;;  %vm128_vm6 = vweird.f32 %v111_v39 }
 0x10e   :  { %v114_v41 = vmul.f32 %v2121_v38, %v113_v40 }
 0x110   :  { %v115_v42 = vmul.f32 0.5, %v114_v41 }
 0x112   :  { %v116_v43 = vsub.f32 1.5, %v115_v42 }
 0x113   :  { %v2123_v44 = vpop.eup %2122 }
 0x114   :  { %v117_v45 = vmul.f32 %v2121_v38, %v116_v43  ;;  %v123_v46 = vmul.f32 %v2123_v44, %v111_v39  ;;  %vm129_vm5 = vweird.f32 %v2123_v44 }
 0x115   :  { %vm130_vm7 = vmor %vm128_vm6, %vm129_vm5 }
 0x116   :  { %v121_v48 = vsel %vm120_vm4, %v2121_v38, %v117_v45  ;;  %v124_v49 = vmul.f32 %v2123_v44, %v123_v46 }
 0x117   :  { %v132_v50 = vmul.f32 %v121_v48, %v98_v13 }
 0x118   :  { %v125_v52 = vmul.f32 0.5, %v124_v49 }
 0x119   :  { %v137_v53 = vmul.f32 %v2094_v47, %v132_v50 }
 0x11a   :  { %v126_v54 = vsub.f32 1.5, %v125_v52 }
 0x11b   :  { %v2430_v55 = vadd.f32 %v2095_v51, %v137_v53 }
 0x11c   :  { %v127_v56 = vmul.f32 %v2123_v44, %v126_v54 }
 0x11d   :  { %1926 = vmatmul.msk.f32.vlgmr.msra.gmra.mxu0 %vm82_vm0, %v2430_v55  ;;  %1928 = vmatmul.msk.f32.vlgmr.msra.gmra.mxu1 %vm82_vm0, %v2430_v55 }
 0x11e   :  { %v131_v57 = vsel %vm130_vm7, %v2123_v44, %v127_v56 }
 0x11f   :  { %v133_v58 = vmul.f32 %v131_v57, %v2381_v18 }
 0x121   :  { %v138_v59 = vmul.f32 %v2094_v47, %v133_v58 }
 0x123   :  { %v2437_v60 = vadd.f32 %v2095_v51, %v138_v59 }
 0x125   :  { %1927 = vmatmul.msk.f32.gmra.mxu0 %vm82_vm0, %v2437_v60  ;;  %1929 = vmatmul.msk.f32.gmra.mxu1 %vm82_vm0, %v2437_v60 }
 0x126   :  { %1931 = vmatmul.msk.f32.vlgmr.msra.gmra.mxu2 %vm82_vm0, %v2437_v60 }
 0x12d   :  { %1930 = vmatmul.msk.f32.vlgmr.msrb.gmra.mxu0 %vm82_vm0, %v2430_v55 }
 0x19a   :  { %v189_v63 = vpop.f32.mrf.mxu0  ;;  %v216_v0 = vpop.f32.mrf.mxu1 }
 0x19b   :  { %v190_v1 = vadd.f32 %v2096_v61, %v189_v63  ;;  %v217_v2 = vadd.f32 %v2097_v62, %v216_v0 }
 0x19d   :  { %273 = vrot.lane.b32.xlu2 %v217_v2, %s2999_s6  ;;  %259 = vrot.lane.b32.xlu0 %v190_v1, %s2999_s6 }
 0x1a2   :  { %v192_v3 = vpop.f32.mrf.mxu0  ;;  %v219_v4 = vpop.f32.mrf.mxu1 }
 0x1a3   :  { %v220_v5 = vadd.f32 %v2097_v62, %v219_v4  ;;  %v193_v12 = vadd.f32 %v2096_v61, %v192_v3 }
 0x1a5   :  { %269 = vrot.lane.b32.xlu0 %v217_v2, %s3003_s2  ;;  %267 = vrot.lane.b32.xlu1 %v220_v5, %s3001_s29 }
 0x1a6   :  { %275 = vrot.lane.b32.xlu2 %v220_v5, %s2999_s6  ;;  %1932 = vmatpush.xpose.msk.msra.mxu3 %vm297_vm8, %v220_v5 }
 0x1a9   :  { %v246_v7 = vpop.f32.mrf.mxu2 }
 0x1aa   :  { %v247_v8 = vadd.f32 %v2098_v6, %v246_v7  ;;  %1933 = vmatpush.xpose.msk.msra.mxu3 %vm297_vm8, %v217_v2  ;;  %v243_v9 = vpop.f32.mrf.mxu0 }
 0x1ab   :  { %v244_v11 = vadd.f32 %v2098_v6, %v243_v9 }
 0x1ad   :  { %1934 = vmatmul.msk.f32.vlgmr.msra.gmra.mxu3 %vm297_vm8, %v190_v1  ;;  %255 = vrot.lane.b32.xlu1 %v190_v1, %s3003_s2  ;;  %v2465_v13 = vpack.i.bf16 %v244_v11, %v247_v8 }
 0x1ae   :  { %547 = vmatpush.msrb.mxu3 %v247_v8  ;;  %265 = vrot.lane.b32.xlu2 %v217_v2, %s3001_s29 }
 0x1af   :  { %253 = vrot.lane.b32.xlu0 %v193_v12, %s3001_s29 }
 0x1b0   :  { %548 = vmatpush.msrb.mxu3 %v244_v11 }
 0x1b5   :  { %1935 = vmatmul.msk.f32.gmra.mxu3 %vm297_vm8, %v193_v12 }
 0x1b6   :  { %261 = vrot.lane.b32.xlu2 %v193_v12, %s2999_s6 }
 0x1be   :  { %271 = vrot.lane.b32.xlu2 %v220_v5, %s3003_s2 }
 0x1c6   :  { %251 = vrot.lane.b32.xlu2 %v190_v1, %s3001_s29 }
 0x1ce   :  { %257 = vrot.lane.b32.xlu2 %v193_v12, %s3003_s2 }
 0x1f7   :  { %v274_v14 = vpop.permute.xlu2 %273 }
 0x200   :  { %v276_v15 = vpop.permute.xlu2 %275 }
 0x201   :  { %1944 = vmatpush.xpose.msk.msrb.mxu2 %vm297_vm8, %v276_v15 }
 0x205   :  { %1945 = vmatpush.xpose.msk.msrb.mxu2 %vm297_vm8, %v274_v14 }
 0x208   :  { %v266_v16 = vpop.permute.xlu2 %265 }
 0x20f   :  { %v260_v17 = vpop.permute.xlu0 %259 }
 0x210   :  { %v262_v18 = vpop.permute.xlu2 %261  ;;  %1946 = vmatmul.msk.f32.vlgmr.msrb.gmra.mxu2 %vm297_vm8, %v260_v17 }
 0x217   :  { %v268_v19 = vpop.permute.xlu1 %267  ;;  %v270_v21 = vpop.permute.xlu0 %269 }
 0x218   :  { %v272_v20 = vpop.permute.xlu2 %271  ;;  %1936 = vmatpush.xpose.msk.msra.mxu0 %vm297_vm8, %v268_v19  ;;  %1947 = vmatmul.msk.f32.gmra.mxu2 %vm297_vm8, %v262_v18 }
 0x219   :  { %1940 = vmatpush.xpose.msk.msrb.mxu1 %vm297_vm8, %v272_v20 }
 0x21c   :  { %1937 = vmatpush.xpose.msk.msra.mxu0 %vm297_vm8, %v266_v16 }
 0x21d   :  { %1941 = vmatpush.xpose.msk.msrb.mxu1 %vm297_vm8, %v270_v21 }
 0x21f   :  { %v256_v22 = vpop.permute.xlu1 %255 }
 0x220   :  { %v252_v23 = vpop.permute.xlu2 %251  ;;  %1942 = vmatmul.msk.f32.vlgmr.msrb.gmra.mxu1 %vm297_vm8, %v256_v22 }
 0x221   :  { %1938 = vmatmul.msk.f32.vlgmr.msra.gmra.mxu0 %vm297_vm8, %v252_v23  ;;  %v254_v24 = vpop.permute.xlu0 %253 }
 0x228   :  { %v258_v25 = vpop.permute.xlu2 %257 }
 0x229   :  { %1939 = vmatmul.msk.f32.gmra.mxu0 %vm297_vm8, %v254_v24  ;;  %1943 = vmatmul.msk.f32.gmra.mxu1 %vm297_vm8, %v258_v25 }
 0x230   :  { %v323_v26 = vpop.f32.mrf.mxu3 }
 0x231   :  { %v422_v28 = vmul.f32 0.35355338, %v323_v26 }
 0x233   :  { %v430_v29 = vadd.f32 %v422_v28, %v2489_v27 }
 0x235   :  { %v439_v30 = vsel %vm438_vm9, %v430_v29, -inf }
 0x236   :  { %440 = vmax.xlane.f32.xlu1 %v439_v30 }
 0x238   :  { %v326_v31 = vpop.f32.mrf.mxu3 }
 0x239   :  { %v423_v33 = vmul.f32 0.35355338, %v326_v31 }
 0x23b   :  { %v431_v34 = vadd.f32 %v423_v33, %v2496_v32 }
 0x23d   :  { %v442_v35 = vsel %vm438_vm9, %v431_v34, -inf }
 0x23e   :  { %443 = vmax.xlane.f32.xlu2 %v442_v35 }
 0x293   :  { %v416_v36 = vpop.f32.mrf.mxu2 }
 0x294   :  { %v428_v37 = vmul.f32 0.35355338, %v416_v36 }
 0x296   :  { %v436_v38 = vadd.f32 %v428_v37, %v2489_v27 }
 0x298   :  { %v457_v39 = vsel %vm438_vm9, %v436_v38, -inf }
 0x299   :  { %458 = vmax.xlane.f32.xlu0 %v457_v39 }
 0x29b   :  { %v419_v40 = vpop.f32.mrf.mxu2 }
 0x29c   :  { %v429_v41 = vmul.f32 0.35355338, %v419_v40 }
 0x29d   :  { %v385_v42 = vpop.f32.mrf.mxu1 }
 0x29e   :  { %v354_v43 = vpop.f32.mrf.mxu0  ;;  %v426_v44 = vmul.f32 0.35355338, %v385_v42  ;;  %v437_v45 = vadd.f32 %v429_v41, %v2496_v32 }
 0x29f   :  { %v424_v46 = vmul.f32 0.35355338, %v354_v43 }
 0x2a0   :  { %v460_v47 = vsel %vm438_vm9, %v437_v45, -inf  ;;  %v434_v48 = vadd.f32 %v426_v44, %v2489_v27 }
 0x2a1   :  { %461 = vmax.xlane.f32.xlu0 %v460_v47  ;;  %v432_v49 = vadd.f32 %v424_v46, %v2489_v27 }
 0x2a2   :  { %v451_v50 = vsel %vm438_vm9, %v434_v48, -inf }
 0x2a3   :  { %v445_v51 = vsel %vm438_vm9, %v432_v49, -inf  ;;  %452 = vmax.xlane.f32.xlu2 %v451_v50 }
 0x2a4   :  { %446 = vmax.xlane.f32.xlu1 %v445_v51 }
 0x2a6   :  { %v357_v52 = vpop.f32.mrf.mxu0  ;;  %v388_v53 = vpop.f32.mrf.mxu1 }
 0x2a7   :  { %v425_v54 = vmul.f32 0.35355338, %v357_v52  ;;  %v427_v56 = vmul.f32 0.35355338, %v388_v53 }
 0x2a9   :  { %v435_v57 = vadd.f32 %v427_v56, %v2496_v32  ;;  %v433_v58 = vadd.f32 %v425_v54, %v2496_v32  ;;  %v441_v3 = vpop.xlane.xlu1 %440 }
 0x2aa   :  { %v463_v4 = vsub.f32 %v430_v29, %v441_v3 }
 0x2ab   :  { %v454_v59 = vsel %vm438_vm9, %v435_v57, -inf  ;;  %v448_v61 = vsel %vm438_vm9, %v433_v58, -inf }
 0x2ac   :  { %455 = vmax.xlane.f32.xlu0 %v454_v59  ;;  %449 = vmax.xlane.f32.xlu1 %v448_v61  ;;  %v471_v5 = vmul.f32 1.442695, %v463_v4 }
 0x2b1   :  { %v444_v62 = vpop.xlane.xlu2 %443 }
 0x2b2   :  { %v464_v63 = vsub.f32 %v431_v34, %v444_v62 }
 0x2b4   :  { %v473_v0 = vmul.f32 1.442695, %v464_v63 }
 0x2b6   :  { %2124 = vpow2.f32 %v473_v0 }
 0x2b7   :  { %2126 = vpow2.f32 %v471_v5 }
 0x2bb   :  { %2065 = vrot.lane.b32.xlu2 %v2465_v13, %s2999_s6 }
 0x2bc   :  { %v2514_v1 = vpop.eup %2124 }
 0x2bd   :  { %v490_v2 = vsel %vm438_vm9, %v2514_v1, 0.0  ;;  %v2127_v6 = vpop.eup %2126 }
 0x2be   :  { %491 = vadd.xlane.f32.xlu0 %v490_v2  ;;  %v487_v7 = vsel %vm438_vm9, %v2127_v6, 0.0 }
 0x2e4   :  { %488 = vadd.xlane.f32.xlu2 %v487_v7 }
 0x2fc   :  { %2075 = vrot.lane.b32.xlu2 %v2465_v13, %s3003_s2  ;;  %s3024_s2 = smov 120  }
 0x30c   :  { %v459_v8 = vpop.xlane.xlu0 %458 }
 0x30d   :  { %v469_v17 = vsub.f32 %v436_v38, %v459_v8 }
 0x30f   :  { %v483_v19 = vmul.f32 1.442695, %v469_v17  ;;  %v159_v17 = vld [vmem:[%s2977_s10 + $0x8] sm:$0xff] }
 0x314   :  { %v462_v9 = vpop.xlane.xlu0 %461 }
 0x315   :  { %v470_v11 = vsub.f32 %v437_v45, %v462_v9 }
 0x316   :  { %v453_v12 = vpop.xlane.xlu2 %452 }
 0x317   :  { %v485_v14 = vmul.f32 1.442695, %v470_v11  ;;  %v447_v15 = vpop.xlane.xlu1 %446  ;;  %v467_v26 = vsub.f32 %v434_v48, %v453_v12 }
 0x318   :  { %v465_v16 = vsub.f32 %v432_v49, %v447_v15 }
 0x319   :  { %2128 = vpow2.f32 %v485_v14  ;;  %v479_v29 = vmul.f32 1.442695, %v467_v26  ;;  %v158_v14 = vld [vmem:[%s2977_s10] sm:$0xff] }
 0x31a   :  { %v475_v18 = vmul.f32 1.442695, %v465_v16  ;;  %665 = vmatpush.msra.mxu3 %v158_v14  ;;  %v2099_v26 = vld [vmem:[%s2978_s11] ss:$0 sm:$0xff] }
 0x31c   :  { %2130 = vpow2.f32 %v475_v18  ;;  %v161_v18 = vld [vmem:[%s2977_s10 + $0x18] sm:$0xff] }
 0x31d   :  { %2132 = vpow2.f32 %v483_v19  ;;  %v160_v19 = vld [vmem:[%s2977_s10 + $0x10] sm:$0xff] }
 0x31e   :  { %v2066_v20 = vpop.permute.xlu2 %2065  ;;  %2134 = vpow2.f32 %v479_v29 }
 0x31f   :  { %v2521_v21 = vpop.eup %2128  ;;  %v2067_v22 = vunpack.i.l.bf16 %v2066_v20  ;;  %v2068_v24 = vunpack.i.h.bf16 %v2066_v20  ;;  %v450_v30 = vpop.xlane.xlu1 %449 }
 0x320   :  { %v508_v23 = vsel %vm438_vm9, %v2521_v21, 0.0  ;;  %v466_v33 = vsub.f32 %v433_v58, %v450_v30  ;;  %v456_v36 = vpop.xlane.xlu0 %455 }
 0x321   :  { %634 = vmatpush.msra.mxu2 %v2067_v22  ;;  %509 = vadd.xlane.f32.xlu0 %v508_v23  ;;  %v468_v38 = vsub.f32 %v435_v57, %v456_v36 }
 0x322   :  { %v2131_v25 = vpop.eup %2130  ;;  %v477_v35 = vmul.f32 1.442695, %v466_v33 }
 0x323   :  { %635 = vmatpush.msra.mxu2 %v2068_v24  ;;  %v493_v28 = vsel %vm438_vm9, %v2131_v25, 0.0  ;;  %v2133_v31 = vpop.eup %2132  ;;  %v481_v40 = vmul.f32 1.442695, %v468_v38 }
 0x324   :  { %494 = vadd.xlane.f32.xlu1 %v493_v28  ;;  %v505_v34 = vsel %vm438_vm9, %v2133_v31, 0.0  ;;  %v2135_v37 = vpop.eup %2134  ;;  %2136 = vpow2.f32 %v477_v35 }
 0x325   :  { %v499_v39 = vsel %vm438_vm9, %v2135_v37, 0.0  ;;  %2138 = vpow2.f32 %v481_v40  ;;  %761 = vmatpush.msrb.mxu2 %v161_v18  ;;  %v2101_v18 = vld [vmem:[%s2980_s13] ss:$0 sm:$0xff] }
 0x32a   :  { %v2137_v41 = vpop.eup %2136 }
 0x32b   :  { %v496_v42 = vsel %vm438_vm9, %v2137_v41, 0.0  ;;  %v2139_v43 = vpop.eup %2138 }
 0x32c   :  { %506 = vadd.xlane.f32.xlu1 %v505_v34  ;;  %v502_v44 = vsel %vm438_vm9, %v2139_v43, 0.0 }
 0x331   :  { %v492_v46 = vpop.xlane.xlu0 %491 }
 0x334   :  { %500 = vadd.xlane.f32.xlu1 %v499_v39 }
 0x335   :  { %2070 = vrot.lane.b32.xlu0 %v2465_v13, %s3001_s29 }
 0x33c   :  { %497 = vadd.xlane.f32.xlu1 %v496_v42 }
 0x344   :  { %503 = vadd.xlane.f32.xlu1 %v502_v44 }
 0x357   :  { %v489_v45 = vpop.xlane.xlu2 %488 }
 0x358   :  { %2140 = vrcp.f32 %v489_v45 }
 0x359   :  { %2142 = vrcp.f32 %v492_v46 }
 0x35e   :  { %v2141_v47 = vpop.eup %2140 }
 0x35f   :  { %v2076_v48 = vpop.permute.xlu2 %2075  ;;  %v519_v49 = vmul.f32 %v2141_v47, %v2127_v6  ;;  %v2143_v51 = vpop.eup %2142 }
 0x360   :  { %v2077_v50 = vunpack.i.l.bf16 %v2076_v48  ;;  %v2078_v13 = vunpack.i.h.bf16 %v2076_v48  ;;  %v520_v52 = vmul.f32 %v2143_v51, %v2514_v1 }
 0x361   :  { %1948 = vmatmul.msk.f32.vlgmr.msrb.gmra.mxu3 %vm438_vm9, %v519_v49 }
 0x362   :  { %605 = vmatpush.msra.mxu1 %v2077_v50 }
 0x364   :  { %606 = vmatpush.msra.mxu1 %v2078_v13 }
 0x366   :  { %730 = vmatpush.msrb.mxu1 %v160_v19 }
 0x369   :  { %1949 = vmatmul.msk.f32.gmra.mxu3 %vm438_vm9, %v520_v52 }
 0x394   :  { %v510_v54 = vpop.xlane.xlu0 %509 }
 0x397   :  { %v495_v53 = vpop.xlane.xlu1 %494 }
 0x39f   :  { %v507_v56 = vpop.xlane.xlu1 %506 }
 0x3a0   :  { %2144 = vrcp.f32 %v507_v56 }
 0x3a1   :  { %2146 = vrcp.f32 %v495_v53 }
 0x3a2   :  { %2148 = vrcp.f32 %v510_v54 }
 0x3a6   :  { %v2145_v57 = vpop.eup %2144 }
 0x3a7   :  { %v525_v58 = vmul.f32 %v2145_v57, %v2133_v31  ;;  %v501_v59 = vpop.xlane.xlu1 %500  ;;  %v2071_v61 = vpop.permute.xlu0 %2070 }
 0x3a8   :  { %v2147_v62 = vpop.eup %2146  ;;  %2150 = vrcp.f32 %v501_v59  ;;  %v2072_v63 = vunpack.i.l.bf16 %v2071_v61  ;;  %v2073_v0 = vunpack.i.h.bf16 %v2071_v61  ;;  %v830_v59 = vld [vmem:[%s2981_s14 + $0x8] sm:$0xff]  ;;  %v829_v61 = vld [vmem:[%s2981_s14] sm:$0xff] }
 0x3a9   :  { %1954 = vmatmul.msk.f32.vlgmr.msra.gmra.mxu2 %vm438_vm9, %v525_v58  ;;  %v521_v1 = vmul.f32 %v2147_v62, %v2131_v25  ;;  %v2149_v2 = vpop.eup %2148  ;;  %v831_v58 = vld [vmem:[%s2981_s14 + $0x10] sm:$0xff] }
 0x3aa   :  { %576 = vmatpush.msrb.mxu0 %v2072_v63  ;;  %v526_v6 = vmul.f32 %v2149_v2, %v2521_v21  ;;  %v899_v2 = vld [vmem:[%s2983_s16 + $0x78] sm:$0xff] }
 0x3ac   :  { %577 = vmatpush.msrb.mxu0 %v2073_v0 }
 0x3ad   :  { %1950 = vmatmul.msk.f32.vlgmr.msrb.gmra.mxu0 %vm438_vm9, %v521_v1 }
 0x3ae   :  { %v2151_v3 = vpop.eup %2150  ;;  %699 = vmatpush.msra.mxu0 %v159_v17 }
 0x3af   :  { %v523_v4 = vmul.f32 %v2151_v3, %v2135_v37  ;;  %v498_v5 = vpop.xlane.xlu1 %497  ;;  %v898_v3 = vld [vmem:[%s2983_s16 + $0x70] sm:$0xff] }
 0x3b0   :  { %2152 = vrcp.f32 %v498_v5  ;;  %904 = vmatpush.msrb.mxu0 %v899_v2  ;;  %v897_v5 = vld [vmem:[%s2983_s16 + $0x68] sm:$0xff] }
 0x3b1   :  { %1952 = vmatmul.msk.f32.vlgmr.msra.gmra.mxu1 %vm438_vm9, %v523_v4  ;;  %1955 = vmatmul.msk.f32.gmra.mxu2 %vm438_vm9, %v526_v6 }
 0x3b2   :  { %905 = vmatpush.msrb.mxu0 %v898_v3 }
 0x3b4   :  { %906 = vmatpush.msrb.mxu0 %v897_v5 }
 0x3b6   :  { %v2153_v7 = vpop.eup %2152 }
 0x3b7   :  { %v504_v8 = vpop.xlane.xlu1 %503  ;;  %v522_v9 = vmul.f32 %v2153_v7, %v2137_v41 }
 0x3b8   :  { %2154 = vrcp.f32 %v504_v8 }
 0x3b9   :  { %1951 = vmatmul.msk.f32.gmra.mxu0 %vm438_vm9, %v522_v9 }
 0x3be   :  { %v2155_v11 = vpop.eup %2154 }
 0x3bf   :  { %v524_v12 = vmul.f32 %v2155_v11, %v2139_v43 }
 0x3c1   :  { %1953 = vmatmul.msk.f32.gmra.mxu1 %vm438_vm9, %v524_v12 }
 0x3e4   :  { %v550_v15 = vpop.f32.mrf.mxu3 }
 0x3e5   :  { %1956 = vmatmul.msk.f32.vlgmr.msra.gmra.mxu3 %vm297_vm8, %v550_v15  ;;  %v2100_v15 = vld [vmem:[%s2979_s12] ss:$0 sm:$0xff] }
 0x3ec   :  { %v553_v16 = vpop.f32.mrf.mxu3 }
 0x3ed   :  { %1957 = vmatmul.msk.f32.gmra.mxu3 %vm297_vm8, %v553_v16 }
 0x42a   :  { %v579_v20 = vpop.f32.mrf.mxu0 }
 0x42b   :  { %1958 = vmatmul.msk.f32.vlgmr.msra.gmra.mxu0 %vm297_vm8, %v579_v20 }
 0x42c   :  { %v637_v21 = vpop.f32.mrf.mxu2 }
 0x42d   :  { %1962 = vmatmul.msk.f32.vlgmr.msrb.gmra.mxu2 %vm297_vm8, %v637_v21 }
 0x42e   :  { %v608_v22 = vpop.f32.mrf.mxu1 }
 0x42f   :  { %1960 = vmatmul.msk.f32.vlgmr.msrb.gmra.mxu1 %vm297_vm8, %v608_v22 }
 0x434   :  { %v640_v23 = vpop.f32.mrf.mxu2 }
 0x435   :  { %1963 = vmatmul.msk.f32.gmra.mxu2 %vm297_vm8, %v640_v23 }
 0x436   :  { %v582_v24 = vpop.f32.mrf.mxu0 }
 0x437   :  { %1959 = vmatmul.msk.f32.gmra.mxu0 %vm297_vm8, %v582_v24 }
 0x43e   :  { %v611_v25 = vpop.f32.mrf.mxu1 }
 0x43f   :  { %1961 = vmatmul.msk.f32.gmra.mxu1 %vm297_vm8, %v611_v25 }
 0x468   :  { %v667_v28 = vpop.f32.mrf.mxu3 }
 0x469   :  { %v676_v30 = vadd.f32 %v2099_v26, %v667_v28 }
 0x470   :  { %v670_v39 = vpop.f32.mrf.mxu3 }
 0x471   :  { %v677_v41 = vadd.f32 %v2099_v26, %v670_v39  ;;  %v890_v39 = vld [vmem:[%s2983_s16 + $0x30] sm:$0xff] }
 0x4a8   :  { %v701_v29 = vpop.f32.mrf.mxu0 }
 0x4a9   :  { %v707_v31 = vadd.f32 %v701_v29, %v676_v30 }
 0x4ac   :  { %v732_v33 = vpop.f32.mrf.mxu1 }
 0x4ad   :  { %v738_v34 = vadd.f32 %v732_v33, %v707_v31  ;;  %v896_v33 = vld [vmem:[%s2983_s16 + $0x60] sm:$0xff] }
 0x4ae   :  { %907 = vmatpush.msrb.mxu0 %v896_v33  ;;  %v1967_v33 = vld [vmem:[%s3015_s0 + $0x28] sm:$0xff] }
 0x4b0   :  { %v763_v35 = vpop.f32.mrf.mxu2 }
 0x4b1   :  { %v769_v36 = vadd.f32 %v763_v35, %v738_v34  ;;  %v895_v34 = vld [vmem:[%s2983_s16 + $0x58] sm:$0xff]  ;;  %v894_v35 = vld [vmem:[%s2983_s16 + $0x50] sm:$0xff] }
 0x4b2   :  { %908 = vmatpush.msrb.mxu0 %v895_v34  ;;  %v1971_v34 = vld [vmem:[%s3016_s3 + $0x28] sm:$0xff] }
 0x4b3   :  { %v771_v37 = vadd.f32 %v769_v36, %v2430_v55  ;;  %v893_v36 = vld [vmem:[%s2983_s16 + $0x48] sm:$0xff] }
 0x4b4   :  { %v704_v40 = vpop.f32.mrf.mxu0  ;;  %909 = vmatpush.msrb.mxu0 %v894_v35  ;;  %v1975_v35 = vld [vmem:[%s3017_s8 + $0x28] sm:$0xff] }
 0x4b5   :  { %v775_v38 = vsel %vm82_vm0, %v771_v37, 0.0  ;;  %v708_v42 = vadd.f32 %v704_v40, %v677_v41  ;;  %v889_v40 = vld [vmem:[%s2983_s16 + $0x28] sm:$0xff]  ;;  %v888_v41 = vld [vmem:[%s2983_s16 + $0x20] sm:$0xff] }
 0x4b6   :  { %776 = vadd.xlane.f32.xlu2 %v775_v38  ;;  %910 = vmatpush.msrb.mxu0 %v893_v36  ;;  %v891_v38 = vld [vmem:[%s2983_s16 + $0x38] sm:$0xff]  ;;  %v1966_v36 = vld [vmem:[%s3015_s0 + $0x20] sm:$0xff] }
 0x4b8   :  { %v766_v45 = vpop.f32.mrf.mxu2 }
 0x4bc   :  { %v735_v43 = vpop.f32.mrf.mxu1 }
 0x4bd   :  { %v739_v44 = vadd.f32 %v735_v43, %v708_v42  ;;  %v887_v42 = vld [vmem:[%s2983_s16 + $0x18] sm:$0xff]  ;;  %v886_v43 = vld [vmem:[%s2983_s16 + $0x10] sm:$0xff] }
 0x4bf   :  { %v770_v46 = vadd.f32 %v766_v45, %v739_v44  ;;  %v885_v44 = vld [vmem:[%s2983_s16 + $0x8] sm:$0xff]  ;;  %v884_v45 = vld [vmem:[%s2983_s16] sm:$0xff] }
 0x4c1   :  { %v772_v47 = vadd.f32 %v770_v46, %v2437_v60  ;;  %v832_v60 = vld [vmem:[%s2981_s14 + $0x18] sm:$0xff]  ;;  %v2102_v46 = vld [vmem:[%s2982_s15] ss:$0 sm:$0xff] }
 0x4c2   :  { %855 = vmatpush.msrb.mxu3 %v832_v60 }
 0x4c3   :  { %v778_v48 = vsel %vm82_vm0, %v772_v47, 0.0 }
 0x4c4   :  { %779 = vadd.xlane.f32.xlu0 %v778_v48  ;;  %856 = vmatpush.msrb.mxu3 %v831_v58 }
 0x4c6   :  { %857 = vmatpush.msrb.mxu3 %v830_v59 }
 0x4c8   :  { %858 = vmatpush.msrb.mxu3 %v829_v61 }
 0x529   :  { %v777_v49 = vpop.xlane.xlu2 %776 }
 0x52a   :  { %v781_v50 = vmul.f32 %v777_v49, %v2376_v10 }
 0x52c   :  { %v783_v55 = vsub.f32 %v771_v37, %v781_v50  ;;  %v892_v37 = vld [vmem:[%s2983_s16 + $0x40] sm:$0xff] }
 0x52d   :  { %911 = vmatpush.msrb.mxu0 %v892_v37  ;;  %v1970_v37 = vld [vmem:[%s3016_s3 + $0x20] sm:$0xff] }
 0x52e   :  { %v785_v13 = vmul.f32 %v783_v55, %v783_v55 }
 0x52f   :  { %912 = vmatpush.msrb.mxu0 %v891_v38  ;;  %v1974_v38 = vld [vmem:[%s3017_s8 + $0x20] sm:$0xff] }
 0x530   :  { %v787_v51 = vsel %vm82_vm0, %v785_v13, 0.0 }
 0x531   :  { %788 = vadd.xlane.f32.xlu1 %v787_v51  ;;  %913 = vmatpush.msrb.mxu0 %v890_v39 }
 0x533   :  { %914 = vmatpush.msrb.mxu0 %v889_v40 }
 0x535   :  { %915 = vmatpush.msrb.mxu0 %v888_v41 }
 0x537   :  { %v780_v52 = vpop.xlane.xlu0 %779  ;;  %916 = vmatpush.msrb.mxu0 %v887_v42 }
 0x538   :  { %v782_v53 = vmul.f32 %v780_v52, %v2376_v10 }
 0x539   :  { %917 = vmatpush.msrb.mxu0 %v886_v43 }
 0x53a   :  { %v784_v54 = vsub.f32 %v772_v47, %v782_v53 }
 0x53b   :  { %918 = vmatpush.msrb.mxu0 %v885_v44 }
 0x53c   :  { %v786_v56 = vmul.f32 %v784_v54, %v784_v54 }
 0x53d   :  { %919 = vmatpush.msrb.mxu0 %v884_v45 }
 0x53e   :  { %v790_v57 = vsel %vm82_vm0, %v786_v56, 0.0 }
 0x53f   :  { %791 = vadd.xlane.f32.xlu1 %v790_v57 }
 0x5a4   :  { %v789_v62 = vpop.xlane.xlu1 %788 }
 0x5a5   :  { %v793_v63 = vmul.f32 %v789_v62, %v2376_v10 }
 0x5a7   :  { %v795_v0 = vadd.f32 1e-12, %v793_v63 }
 0x5a9   :  { %2156 = vrsqrt.f32 %v795_v0  ;;  %vm803_vm11 = vweird.f32 %v795_v0 }
 0x5af   :  { %v2157_v1 = vpop.eup %2156 }
 0x5b0   :  { %v798_v4 = vmul.f32 %v2157_v1, %v795_v0  ;;  %vm804_vm10 = vweird.f32 %v2157_v1 }
 0x5b1   :  { %vm805_vm12 = vmor %vm803_vm11, %vm804_vm10 }
 0x5b2   :  { %v799_v6 = vmul.f32 %v2157_v1, %v798_v4  ;;  %v792_v7 = vpop.xlane.xlu1 %791  ;;  %v2103_v4 = vld [vmem:[%s2984_s17] ss:$0 sm:$0xff] }
 0x5b3   :  { %v794_v8 = vmul.f32 %v792_v7, %v2376_v10 }
 0x5b4   :  { %v800_v9 = vmul.f32 0.5, %v799_v6 }
 0x5b5   :  { %v796_v11 = vadd.f32 1e-12, %v794_v8 }
 0x5b6   :  { %v801_v12 = vsub.f32 1.5, %v800_v9 }
 0x5b7   :  { %2158 = vrsqrt.f32 %v796_v11  ;;  %vm813_vm14 = vweird.f32 %v796_v11 }
 0x5b8   :  { %v802_v14 = vmul.f32 %v2157_v1, %v801_v12 }
 0x5ba   :  { %v806_v16 = vsel %vm805_vm12, %v2157_v1, %v802_v14 }
 0x5bb   :  { %v817_v17 = vmul.f32 %v806_v16, %v783_v55 }
 0x5bd   :  { %v2159_v19 = vpop.eup %2158  ;;  %v822_v20 = vmul.f32 %v2100_v15, %v817_v17 }
 0x5be   :  { %v808_v21 = vmul.f32 %v2159_v19, %v796_v11  ;;  %vm814_vm13 = vweird.f32 %v2159_v19 }
 0x5bf   :  { %v2602_v22 = vadd.f32 %v2101_v18, %v822_v20  ;;  %vm815_vm15 = vmor %vm813_vm14, %vm814_vm13 }
 0x5c0   :  { %v809_v23 = vmul.f32 %v2159_v19, %v808_v21 }
 0x5c1   :  { %1964 = vmatmul.msk.f32.vlgmr.msrb.gmra.mxu3 %vm82_vm0, %v2602_v22 }
 0x5c2   :  { %v810_v24 = vmul.f32 0.5, %v809_v23 }
 0x5c4   :  { %v811_v25 = vsub.f32 1.5, %v810_v24 }
 0x5c6   :  { %v812_v26 = vmul.f32 %v2159_v19, %v811_v25  ;;  %v1969_v25 = vld [vmem:[%s3015_s0 + $0x38] sm:$0xff] }
 0x5c7   :  { %1028 = vmatpush.msra.mxu1 %v1969_v25 }
 0x5c8   :  { %v816_v28 = vsel %vm815_vm15, %v2159_v19, %v812_v26  ;;  %v1973_v26 = vld [vmem:[%s3016_s3 + $0x38] sm:$0xff] }
 0x5c9   :  { %v818_v29 = vmul.f32 %v816_v28, %v784_v54  ;;  %v1977_v28 = vld [vmem:[%s3017_s8 + $0x38] sm:$0xff]  ;;  %1056 = vmatpush.msra.mxu2 %v1973_v26 }
 0x5ca   :  { %1084 = vmatpush.msra.mxu3 %v1977_v28 }
 0x5cb   :  { %v823_v30 = vmul.f32 %v2100_v15, %v818_v29  ;;  %v1968_v29 = vld [vmem:[%s3015_s0 + $0x30] sm:$0xff] }
 0x5cc   :  { %1029 = vmatpush.msra.mxu1 %v1968_v29 }
 0x5cd   :  { %v2606_v31 = vadd.f32 %v2101_v18, %v823_v30  ;;  %v1972_v30 = vld [vmem:[%s3016_s3 + $0x30] sm:$0xff] }
 0x5ce   :  { %1057 = vmatpush.msra.mxu2 %v1972_v30  ;;  %1030 = vmatpush.msra.mxu1 %v1967_v33 }
 0x5cf   :  { %1965 = vmatmul.msk.f32.gmra.mxu3 %vm82_vm0, %v2606_v31 }
 0x5d0   :  { %1058 = vmatpush.msra.mxu2 %v1971_v34  ;;  %1031 = vmatpush.msra.mxu1 %v1966_v36 }
 0x5d2   :  { %1059 = vmatpush.msra.mxu2 %v1970_v37 }
 0x644   :  { %v860_v47 = vpop.f32.mrf.mxu3 }
 0x645   :  { %v861_v48 = vadd.f32 %v2102_v46, %v860_v47 }
 0x647   :  { %v866_v49 = vmul.f32 %v861_v48, %v861_v48 }
 0x649   :  { %v868_v50 = vmul.f32 %v866_v49, %v861_v48 }
 0x64b   :  { %v870_v55 = vmul.f32 0.044715, %v868_v50 }
 0x64d   :  { %v872_v13 = vadd.f32 %v870_v55, %v861_v48  ;;  %v2104_v55 = vld [vmem:[%s2985_s18] ss:$0 sm:$0xff] }
 0x64f   :  { %v874_v51 = vmul.f32 0.7978846, %v872_v13 }
 0x651   :  { %2160 = vtanh.f32 %v874_v51 }
 0x652   :  { %v863_v52 = vpop.f32.mrf.mxu3 }
 0x653   :  { %v864_v53 = vadd.f32 %v2102_v46, %v863_v52  ;;  %v2105_v52 = vld [vmem:[%s2986_s19] ss:$0 sm:$0xff] }
 0x655   :  { %v867_v54 = vmul.f32 %v864_v53, %v864_v53 }
 0x657   :  { %v2161_v56 = vpop.eup %2160  ;;  %v869_v57 = vmul.f32 %v867_v54, %v864_v53 }
 0x658   :  { %v878_v60 = vadd.f32 1.0, %v2161_v56 }
 0x659   :  { %v871_v58 = vmul.f32 0.044715, %v869_v57 }
 0x65a   :  { %v880_v59 = vmul.f32 0.5, %v878_v60 }
 0x65b   :  { %v873_v61 = vadd.f32 %v871_v58, %v864_v53 }
 0x65c   :  { %v882_v62 = vmul.f32 %v880_v59, %v861_v48 }
 0x65d   :  { %v875_v63 = vmul.f32 0.7978846, %v873_v61 }
 0x65e   :  { %920 = vmatmul.f32.vlgmr.msrb.gmra.mxu0 %v882_v62 }
 0x65f   :  { %2162 = vtanh.f32 %v875_v63 }
 0x665   :  { %v2163_v0 = vpop.eup %2162 }
 0x666   :  { %v879_v1 = vadd.f32 1.0, %v2163_v0 }
 0x668   :  { %v881_v2 = vmul.f32 0.5, %v879_v1 }
 0x66a   :  { %v883_v3 = vmul.f32 %v881_v2, %v864_v53  ;;  %v2107_v2 = vld [vmem:[%s3021_s28 + $0x1] ss:$0 sm:$0xff] }
 0x66c   :  { %923 = vmatmul.f32.gmra.mxu0 %v883_v3 }
 0x6db   :  { %v921_v5 = vpop.f32.mrf.mxu0 }
 0x6dc   :  { %v922_v6 = vadd.f32 %v2103_v4, %v921_v5 }
 0x6de   :  { %v927_v7 = vadd.f32 %v922_v6, %v2602_v22  ;;  %v2106_v6 = vld [vmem:[%s3020_s5 + $0x1] ss:$0 sm:$0xff]  ;;  %s3025_s5 = smov 104  }
 0x6e0   :  { %v931_v8 = vsel %vm82_vm0, %v927_v7, 0.0 }
 0x6e1   :  { %932 = vadd.xlane.f32.xlu1 %v931_v8 }
 0x6e9   :  { %v924_v9 = vpop.f32.mrf.mxu0 }
 0x6ea   :  { %v925_v11 = vadd.f32 %v2103_v4, %v924_v9 }
 0x6ec   :  { %v928_v12 = vadd.f32 %v925_v11, %v2606_v31  ;;  %v1976_v31 = vld [vmem:[%s3017_s8 + $0x30] sm:$0xff]  ;;  %v2108_v11 = vld [vmem:[%s2976_s9 + $0x1] ss:$0 sm:$0xff] }
 0x6ed   :  { %1085 = vmatpush.msra.mxu3 %v1976_v31 }
 0x6ee   :  { %v934_v14 = vsel %vm82_vm0, %v928_v12, 0.0 }
 0x6ef   :  { %935 = vadd.xlane.f32.xlu1 %v934_v14  ;;  %1086 = vmatpush.msra.mxu3 %v1975_v35 }
 0x6f1   :  { %1087 = vmatpush.msra.mxu3 %v1974_v38 }
 0x754   :  { %v933_v15 = vpop.xlane.xlu1 %932 }
 0x755   :  { %v937_v16 = vmul.f32 %v933_v15, %v2376_v10 }
 0x757   :  { %v939_v17 = vsub.f32 %v927_v7, %v937_v16 }
 0x759   :  { %v941_v18 = vmul.f32 %v939_v17, %v939_v17 }
 0x75b   :  { %v943_v19 = vsel %vm82_vm0, %v941_v18, 0.0 }
 0x75c   :  { %944 = vadd.xlane.f32.xlu1 %v943_v19 }
 0x762   :  { %v936_v20 = vpop.xlane.xlu1 %935 }
 0x763   :  { %v938_v21 = vmul.f32 %v936_v20, %v2376_v10 }
 0x765   :  { %v2662_v22 = vsub.f32 %v928_v12, %v938_v21 }
 0x767   :  { %v942_v23 = vmul.f32 %v2662_v22, %v2662_v22 }
 0x769   :  { %v946_v24 = vsel %vm82_vm0, %v942_v23, 0.0 }
 0x76a   :  { %947 = vadd.xlane.f32.xlu2 %v946_v24 }
 0x7cf   :  { %v945_v39 = vpop.xlane.xlu1 %944 }
 0x7d0   :  { %v949_v40 = vmul.f32 %v945_v39, %v2376_v10 }
 0x7d2   :  { %v951_v41 = vadd.f32 1e-12, %v949_v40 }
 0x7d4   :  { %2164 = vrsqrt.f32 %v951_v41  ;;  %vm959_vm2 = vweird.f32 %v951_v41 }
 0x7da   :  { %v2165_v42 = vpop.eup %2164 }
 0x7db   :  { %v954_v43 = vmul.f32 %v2165_v42, %v951_v41  ;;  %vm960_vm1 = vweird.f32 %v2165_v42 }
 0x7dc   :  { %vm961_vm3 = vmor %vm959_vm2, %vm960_vm1 }
 0x7dd   :  { %v955_v44 = vmul.f32 %v2165_v42, %v954_v43  ;;  %v948_v45 = vpop.xlane.xlu2 %947 }
 0x7de   :  { %v950_v46 = vmul.f32 %v948_v45, %v2376_v10 }
 0x7df   :  { %v956_v47 = vmul.f32 0.5, %v955_v44 }
 0x7e0   :  { %v952_v48 = vadd.f32 1e-12, %v950_v46 }
 0x7e1   :  { %v957_v49 = vsub.f32 1.5, %v956_v47 }
 0x7e2   :  { %2166 = vrsqrt.f32 %v952_v48  ;;  %vm969_vm5 = vweird.f32 %v952_v48 }
 0x7e3   :  { %v958_v50 = vmul.f32 %v2165_v42, %v957_v49 }
 0x7e5   :  { %v962_v13 = vsel %vm961_vm3, %v2165_v42, %v958_v50 }
 0x7e6   :  { %v973_v51 = vmul.f32 %v962_v13, %v939_v17 }
 0x7e8   :  { %v2167_v53 = vpop.eup %2166  ;;  %v978_v54 = vmul.f32 %v2104_v55, %v973_v51 }
 0x7e9   :  { %v964_v56 = vmul.f32 %v2167_v53, %v952_v48  ;;  %vm970_vm4 = vweird.f32 %v2167_v53 }
 0x7ea   :  { %v2711_v57 = vadd.f32 %v2105_v52, %v978_v54  ;;  %vm971_vm6 = vmor %vm969_vm5, %vm970_vm4  ;;  %vm1841_vm4 = vcmask 1040384   ;;  %vm1884_vm5 = vcmask 1045504  }
 0x7eb   :  { %v965_v60 = vmul.f32 %v2167_v53, %v964_v56 }
 0x7ec   :  { %1983 = vmatmul.msk.f32.vlgmr.msra.gmra.mxu1 %vm82_vm0, %v2711_v57  ;;  %1986 = vmatmul.msk.f32.vlgmr.msra.gmra.mxu2 %vm82_vm0, %v2711_v57 }
 0x7ed   :  { %v966_v58 = vmul.f32 0.5, %v965_v60  ;;  %1989 = vmatmul.msk.f32.vlgmr.msra.gmra.mxu3 %vm82_vm0, %v2711_v57 }
 0x7ef   :  { %v967_v59 = vsub.f32 1.5, %v966_v58 }
 0x7f1   :  { %v968_v61 = vmul.f32 %v2167_v53, %v967_v59 }
 0x7f3   :  { %v972_v62 = vsel %vm971_vm6, %v2167_v53, %v968_v61  ;;  %vm1880_vm6 = vcmask 48128  }
 0x7f4   :  { %v974_v63 = vmul.f32 %v972_v62, %v2662_v22 }
 0x7f6   :  { %v979_v0 = vmul.f32 %v2104_v55, %v974_v63 }
 0x7f8   :  { %v2720_v1 = vadd.f32 %v2105_v52, %v979_v0 }
 0x7fa   :  { %1984 = vmatmul.msk.f32.gmra.mxu1 %vm82_vm0, %v2720_v1  ;;  %1987 = vmatmul.msk.f32.gmra.mxu2 %vm82_vm0, %v2720_v1 }
 0x7fb   :  { %1990 = vmatmul.msk.f32.gmra.mxu3 %vm82_vm0, %v2720_v1 }
 0x869   :  { %v1033_v3 = vpop.f32.mrf.mxu1 }
 0x86a   :  { %v1034_v19 = vadd.f32 %v2106_v6, %v1033_v3 }
 0x86f   :  { %v1061_v4 = vpop.f32.mrf.mxu2 }
 0x870   :  { %v1062_v5 = vadd.f32 %v2107_v2, %v1061_v4  ;;  %v1089_v7 = vpop.f32.mrf.mxu3 }
 0x871   :  { %v1090_v16 = vadd.f32 %v2108_v11, %v1089_v7 }
 0x872   :  { %1115 = vrot.lane.b32.xlu0 %v1062_v5, %s3023_s1  ;;  %1111 = vrot.lane.b32.xlu2 %v1062_v5, %s3024_s2 }
 0x877   :  { %v1036_v8 = vpop.f32.mrf.mxu1 }
 0x878   :  { %v1037_v9 = vadd.f32 %v2106_v6, %v1036_v8 }
 0x87a   :  { %1099 = vrot.lane.b32.xlu2 %v1037_v9, %s3024_s2 }
 0x87d   :  { %v1064_v12 = vpop.f32.mrf.mxu2 }
 0x87e   :  { %v1065_v14 = vadd.f32 %v2107_v2, %v1064_v12  ;;  %v1092_v15 = vpop.f32.mrf.mxu3 }
 0x87f   :  { %v1093_v17 = vadd.f32 %v2108_v11, %v1092_v15 }
 0x880   :  { %1113 = vrot.lane.b32.xlu1 %v1065_v14, %s3024_s2  ;;  %1991 = vmatpush.xpose.msk.msrb.mxu1 %vm297_vm8, %v1065_v14 }
 0x881   :  { %1117 = vrot.lane.b32.xlu0 %v1065_v14, %s3023_s1  ;;  %v2743_v18 = vpack.i.bf16 %v1090_v16, %v1093_v17 }
 0x882   :  { %1119 = vrot.lane.b32.xlu2 %v1062_v5, %s3025_s5 }
 0x884   :  { %1992 = vmatpush.xpose.msk.msrb.mxu1 %vm297_vm8, %v1062_v5 }
 0x887   :  { %1993 = vmatmul.msk.f32.vlgmr.msrb.gmra.mxu1 %vm297_vm8, %v1034_v19 }
 0x888   :  { %1391 = vmatpush.msra.mxu1 %v1093_v17  ;;  %1097 = vrot.lane.b32.xlu1 %v1034_v19, %s3024_s2 }
 0x889   :  { %1101 = vrot.lane.b32.xlu0 %v1034_v19, %s3023_s1 }
 0x88a   :  { %1392 = vmatpush.msra.mxu1 %v1090_v16 }
 0x88f   :  { %1994 = vmatmul.msk.f32.gmra.mxu1 %vm297_vm8, %v1037_v9 }
 0x890   :  { %1103 = vrot.lane.b32.xlu1 %v1037_v9, %s3023_s1 }
 0x891   :  { %1121 = vrot.lane.b32.xlu0 %v1065_v14, %s3025_s5 }
 0x898   :  { %1105 = vrot.lane.b32.xlu1 %v1034_v19, %s3025_s5 }
 0x899   :  { %1107 = vrot.lane.b32.xlu0 %v1037_v9, %s3025_s5 }
 0x8cc   :  { %v1112_v22 = vpop.permute.xlu2 %1111 }
 0x8d4   :  { %v1100_v26 = vpop.permute.xlu2 %1099 }
 0x8dc   :  { %v1120_v33 = vpop.permute.xlu2 %1119 }
 0x8e4   :  { %v1116_v20 = vpop.permute.xlu0 %1115 }
 0x8f2   :  { %v1114_v21 = vpop.permute.xlu1 %1113 }
 0x8f3   :  { %v1118_v23 = vpop.permute.xlu0 %1117  ;;  %1995 = vmatpush.xpose.msk.msrb.mxu2 %vm297_vm8, %v1114_v21 }
 0x8f4   :  { %1999 = vmatpush.xpose.msk.msrb.mxu3 %vm297_vm8, %v1118_v23 }
 0x8f7   :  { %1996 = vmatpush.xpose.msk.msrb.mxu2 %vm297_vm8, %v1112_v22 }
 0x8f8   :  { %2000 = vmatpush.xpose.msk.msrb.mxu3 %vm297_vm8, %v1116_v20 }
 0x8fa   :  { %v1098_v24 = vpop.permute.xlu1 %1097 }
 0x8fb   :  { %v1102_v25 = vpop.permute.xlu0 %1101  ;;  %1997 = vmatmul.msk.f32.vlgmr.msrb.gmra.mxu2 %vm297_vm8, %v1098_v24 }
 0x8fc   :  { %2001 = vmatmul.msk.f32.vlgmr.msrb.gmra.mxu3 %vm297_vm8, %v1102_v25 }
 0x902   :  { %v1104_v28 = vpop.permute.xlu1 %1103 }
 0x903   :  { %v1122_v29 = vpop.permute.xlu0 %1121  ;;  %1998 = vmatmul.msk.f32.gmra.mxu2 %vm297_vm8, %v1100_v26 }
 0x904   :  { %2002 = vmatmul.msk.f32.gmra.mxu3 %vm297_vm8, %v1104_v28  ;;  %2003 = vmatpush.xpose.msk.msra.mxu0 %vm297_vm8, %v1122_v29  ;;  %v1168_v30 = vpop.f32.mrf.mxu1 }
 0x905   :  { %v1267_v31 = vmul.f32 0.35355338, %v1168_v30 }
 0x907   :  { %v1275_v34 = vadd.f32 %v1267_v31, %v2489_v27 }
 0x908   :  { %2004 = vmatpush.xpose.msk.msra.mxu0 %vm297_vm8, %v1120_v33 }
 0x909   :  { %v1283_v35 = vsel %vm438_vm9, %v1275_v34, -inf }
 0x90a   :  { %v1106_v36 = vpop.permute.xlu1 %1105  ;;  %1284 = vmax.xlane.f32.xlu2 %v1283_v35 }
 0x90b   :  { %2005 = vmatmul.msk.f32.vlgmr.msra.gmra.mxu0 %vm297_vm8, %v1106_v36  ;;  %v1108_v37 = vpop.permute.xlu0 %1107 }
 0x90c   :  { %v1171_v41 = vpop.f32.mrf.mxu1 }
 0x90d   :  { %v1268_v45 = vmul.f32 0.35355338, %v1171_v41 }
 0x90f   :  { %v2774_v55 = vadd.f32 %v1268_v45, %v2496_v32 }
 0x911   :  { %v1286_v56 = vsel %vm438_vm9, %v2774_v55, -inf }
 0x913   :  { %2006 = vmatmul.msk.f32.gmra.mxu0 %vm297_vm8, %v1108_v37 }
 0x97d   :  { %v1285_v49 = vpop.xlane.xlu2 %1284 }
 0x97e   :  { %v1199_v38 = vpop.f32.mrf.mxu2  ;;  %v1307_v52 = vsub.f32 %v1275_v34, %v1285_v49 }
 0x97f   :  { %v1269_v39 = vmul.f32 0.35355338, %v1199_v38  ;;  %v1230_v40 = vpop.f32.mrf.mxu3 }
 0x980   :  { %v1271_v42 = vmul.f32 0.35355338, %v1230_v40  ;;  %v1315_v60 = vmul.f32 1.442695, %v1307_v52 }
 0x981   :  { %v1277_v43 = vadd.f32 %v1269_v39, %v2489_v27 }
 0x982   :  { %v1279_v44 = vadd.f32 %v1271_v42, %v2489_v27  ;;  %2168 = vpow2.f32 %v1315_v60 }
 0x983   :  { %v1289_v46 = vsel %vm438_vm9, %v1277_v43, -inf }
 0x984   :  { %v1295_v47 = vsel %vm438_vm9, %v1279_v44, -inf  ;;  %1290 = vmax.xlane.f32.xlu2 %v1289_v46 }
 0x985   :  { %1296 = vmax.xlane.f32.xlu1 %v1295_v47 }
 0x986   :  { %v1202_v48 = vpop.f32.mrf.mxu2 }
 0x987   :  { %v1270_v50 = vmul.f32 0.35355338, %v1202_v48  ;;  %v1233_v62 = vpop.f32.mrf.mxu3 }
 0x988   :  { %v1261_v13 = vpop.f32.mrf.mxu0  ;;  %v1272_v2 = vmul.f32 0.35355338, %v1233_v62  ;;  %v2169_v4 = vpop.eup %2168 }
 0x989   :  { %v1278_v51 = vadd.f32 %v1270_v50, %v2496_v32  ;;  %v1273_v53 = vmul.f32 0.35355338, %v1261_v13 }
 0x98a   :  { %v1280_v5 = vadd.f32 %v1272_v2, %v2496_v32 }
 0x98b   :  { %v1292_v54 = vsel %vm438_vm9, %v1278_v51, -inf  ;;  %v1281_v58 = vadd.f32 %v1273_v53, %v2489_v27  ;;  %v1331_v27 = vsel %vm438_vm9, %v2169_v4, 0.0 }
 0x98c   :  { %1293 = vmax.xlane.f32.xlu0 %v1292_v54  ;;  %1287 = vmax.xlane.f32.xlu2 %v1286_v56  ;;  %v1298_v6 = vsel %vm438_vm9, %v1280_v5, -inf }
 0x98d   :  { %v1301_v63 = vsel %vm438_vm9, %v1281_v58, -inf }
 0x990   :  { %v1264_v59 = vpop.f32.mrf.mxu0 }
 0x991   :  { %v1274_v61 = vmul.f32 0.35355338, %v1264_v59 }
 0x993   :  { %v2783_v0 = vadd.f32 %v1274_v61, %v2496_v32 }
 0x994   :  { %1302 = vmax.xlane.f32.xlu0 %v1301_v63 }
 0x995   :  { %v1304_v3 = vsel %vm438_vm9, %v2783_v0, -inf }
 0x996   :  { %1305 = vmax.xlane.f32.xlu1 %v1304_v3 }
 0x99c   :  { %1332 = vadd.xlane.f32.xlu0 %v1331_v27 }
 0x99e   :  { %1299 = vmax.xlane.f32.xlu1 %v1298_v6 }
 0x9a4   :  { %2085 = vrot.lane.b32.xlu2 %v2743_v18, %s3023_s1 }
 0x9b7   :  { %2080 = vrot.lane.b32.xlu1 %v2743_v18, %s3024_s2 }
 0x9f7   :  { %v1291_v7 = vpop.xlane.xlu2 %1290 }
 0x9f8   :  { %v1297_v8 = vpop.xlane.xlu1 %1296  ;;  %v1309_v9 = vsub.f32 %v1277_v43, %v1291_v7 }
 0x9f9   :  { %v1311_v11 = vsub.f32 %v1279_v44, %v1297_v8 }
 0x9fa   :  { %v1319_v12 = vmul.f32 1.442695, %v1309_v9 }
 0x9fb   :  { %v1323_v14 = vmul.f32 1.442695, %v1311_v11 }
 0x9fc   :  { %2170 = vpow2.f32 %v1319_v12 }
 0x9fd   :  { %2172 = vpow2.f32 %v1323_v14 }
 0x9ff   :  { %v1294_v32 = vpop.xlane.xlu0 %1293  ;;  %v1288_v15 = vpop.xlane.xlu2 %1287 }
 0xa00   :  { %v1310_v16 = vsub.f32 %v1278_v51, %v1294_v32  ;;  %v1308_v39 = vsub.f32 %v2774_v55, %v1288_v15 }
 0xa02   :  { %v2171_v17 = vpop.eup %2170  ;;  %v1321_v19 = vmul.f32 1.442695, %v1310_v16  ;;  %v1317_v43 = vmul.f32 1.442695, %v1308_v39 }
 0xa03   :  { %v2173_v20 = vpop.eup %2172  ;;  %v1337_v21 = vsel %vm438_vm9, %v2171_v17, 0.0 }
 0xa04   :  { %2174 = vpow2.f32 %v1321_v19  ;;  %1338 = vadd.xlane.f32.xlu0 %v1337_v21  ;;  %v1343_v22 = vsel %vm438_vm9, %v2173_v20, 0.0  ;;  %v1980_v19 = vld [vmem:[%s2977_s10 + $0x30] sm:$0xff] }
 0xa05   :  { %1344 = vadd.xlane.f32.xlu2 %v1343_v22 }
 0xa07   :  { %v1303_v23 = vpop.xlane.xlu0 %1302  ;;  %v2086_v24 = vpop.permute.xlu2 %2085 }
 0xa08   :  { %v1313_v25 = vsub.f32 %v1281_v58, %v1303_v23  ;;  %v2087_v26 = vunpack.i.l.bf16 %v2086_v24  ;;  %v2088_v31 = vunpack.i.h.bf16 %v2086_v24 }
 0xa09   :  { %v1306_v28 = vpop.xlane.xlu1 %1305 }
 0xa0a   :  { %v2175_v29 = vpop.eup %2174  ;;  %v1327_v30 = vmul.f32 1.442695, %v1313_v25  ;;  %1449 = vmatpush.msra.mxu3 %v2087_v26  ;;  %v1314_v45 = vsub.f32 %v2783_v0, %v1306_v28  ;;  %v1978_v0 = vld [vmem:[%s2977_s10 + $0x20] sm:$0xff] }
 0xa0b   :  { %v1340_v33 = vsel %vm438_vm9, %v2175_v29, 0.0  ;;  %1510 = vmatpush.msrb.mxu1 %v1978_v0 }
 0xa0c   :  { %2176 = vpow2.f32 %v1327_v30  ;;  %1341 = vadd.xlane.f32.xlu0 %v1340_v33  ;;  %1450 = vmatpush.msra.mxu3 %v2088_v31  ;;  %v1329_v47 = vmul.f32 1.442695, %v1314_v45 }
 0xa0e   :  { %1575 = vmatpush.msrb.mxu3 %v1980_v19 }
 0xa0f   :  { %v1333_v34 = vpop.xlane.xlu0 %1332 }
 0xa10   :  { %2178 = vrcp.f32 %v1333_v34 }
 0xa11   :  { %v1300_v35 = vpop.xlane.xlu1 %1299 }
 0xa12   :  { %v2177_v36 = vpop.eup %2176  ;;  %v1312_v37 = vsub.f32 %v1280_v5, %v1300_v35 }
 0xa13   :  { %v1349_v38 = vsel %vm438_vm9, %v2177_v36, 0.0 }
 0xa14   :  { %v1325_v40 = vmul.f32 1.442695, %v1312_v37  ;;  %1350 = vadd.xlane.f32.xlu1 %v1349_v38 }
 0xa16   :  { %v2179_v41 = vpop.eup %2178  ;;  %2180 = vpow2.f32 %v1325_v40 }
 0xa17   :  { %v1363_v42 = vmul.f32 %v2179_v41, %v2169_v4  ;;  %2182 = vpow2.f32 %v1317_v43 }
 0xa18   :  { %2184 = vpow2.f32 %v1329_v47 }
 0xa19   :  { %2007 = vmatmul.msk.f32.vlgmr.msra.gmra.mxu1 %vm438_vm9, %v1363_v42 }
 0xa1c   :  { %v2181_v44 = vpop.eup %2180 }
 0xa1d   :  { %2090 = vrot.lane.b32.xlu2 %v2743_v18, %s3025_s5  ;;  %v1346_v46 = vsel %vm438_vm9, %v2181_v44, 0.0  ;;  %v2183_v48 = vpop.eup %2182 }
 0xa1e   :  { %1347 = vadd.xlane.f32.xlu0 %v1346_v46  ;;  %v1334_v49 = vsel %vm438_vm9, %v2183_v48, 0.0  ;;  %v2185_v55 = vpop.eup %2184 }
 0xa1f   :  { %v1352_v52 = vsel %vm438_vm9, %v2185_v55, 0.0 }
 0xa26   :  { %1335 = vadd.xlane.f32.xlu0 %v1334_v49 }
 0xa29   :  { %v2081_v50 = vpop.permute.xlu1 %2080 }
 0xa2a   :  { %v2082_v13 = vunpack.i.l.bf16 %v2081_v50  ;;  %v2083_v51 = vunpack.i.h.bf16 %v2081_v50 }
 0xa2c   :  { %1420 = vmatpush.msra.mxu2 %v2082_v13 }
 0xa2e   :  { %1421 = vmatpush.msra.mxu2 %v2083_v51  ;;  %1353 = vadd.xlane.f32.xlu0 %v1352_v52 }
 0xa77   :  { %v1339_v53 = vpop.xlane.xlu0 %1338 }
 0xa78   :  { %2186 = vrcp.f32 %v1339_v53  ;;  %v1345_v18 = vpop.xlane.xlu2 %1344 }
 0xa79   :  { %2188 = vrcp.f32 %v1345_v18 }
 0xa7e   :  { %v2187_v54 = vpop.eup %2186 }
 0xa7f   :  { %v2189_v56 = vpop.eup %2188  ;;  %v1365_v60 = vmul.f32 %v2187_v54, %v2171_v17  ;;  %v1342_v58 = vpop.xlane.xlu0 %1341  ;;  %v1979_v17 = vld [vmem:[%s2977_s10 + $0x28] sm:$0xff] }
 0xa80   :  { %v1367_v59 = vmul.f32 %v2189_v56, %v2173_v20  ;;  %2190 = vrcp.f32 %v1342_v58  ;;  %v2091_v61 = vpop.permute.xlu2 %2090  ;;  %1544 = vmatpush.msrb.mxu2 %v1979_v17  ;;  %v1981_v20 = vld [vmem:[%s2977_s10 + $0x38] sm:$0xff]  ;;  %v2028_v58 = vld [vmem:[%s2981_s14 + $0x30] sm:$0xff] }
 0xa81   :  { %v2092_v62 = vunpack.i.l.bf16 %v2091_v61  ;;  %2009 = vmatmul.msk.f32.vlgmr.msra.gmra.mxu2 %vm438_vm9, %v1365_v60  ;;  %v2093_v63 = vunpack.i.h.bf16 %v2091_v61  ;;  %v2026_v61 = vld [vmem:[%s2981_s14 + $0x20] sm:$0xff] }
 0xa82   :  { %2011 = vmatmul.msk.f32.vlgmr.msra.gmra.mxu3 %vm438_vm9, %v1367_v59  ;;  %v2027_v59 = vld [vmem:[%s2981_s14 + $0x28] sm:$0xff] }
 0xa83   :  { %1478 = vmatpush.msrb.mxu0 %v2092_v62 }
 0xa85   :  { %1479 = vmatpush.msrb.mxu0 %v2093_v63 }
 0xa86   :  { %v2191_v2 = vpop.eup %2190 }
 0xa87   :  { %v1351_v3 = vpop.xlane.xlu1 %1350  ;;  %v1366_v4 = vmul.f32 %v2191_v2, %v2175_v29  ;;  %1606 = vmatpush.msra.mxu0 %v1981_v20  ;;  %v2109_v29 = vld [vmem:[%s2978_s11 + $0x1] ss:$0 sm:$0xff] }
 0xa88   :  { %2192 = vrcp.f32 %v1351_v3 }
 0xa89   :  { %2010 = vmatmul.msk.f32.gmra.mxu2 %vm438_vm9, %v1366_v4 }
 0xa8e   :  { %v2193_v5 = vpop.eup %2192 }
 0xa8f   :  { %v1369_v27 = vmul.f32 %v2193_v5, %v2177_v36 }
 0xa91   :  { %v1348_v6 = vpop.xlane.xlu0 %1347  ;;  %2013 = vmatmul.msk.f32.vlgmr.msrb.gmra.mxu0 %vm438_vm9, %v1369_v27 }
 0xa92   :  { %2194 = vrcp.f32 %v1348_v6 }
 0xa96   :  { %v1394_v16 = vpop.f32.mrf.mxu1 }
 0xa98   :  { %v2195_v7 = vpop.eup %2194 }
 0xa99   :  { %v1336_v8 = vpop.xlane.xlu0 %1335  ;;  %v1368_v9 = vmul.f32 %v2195_v7, %v2181_v44  ;;  %v2110_v7 = vld [vmem:[%s2979_s12 + $0x1] ss:$0 sm:$0xff]  ;;  %s2242_s12 = smov [#allocation2]  }
 0xa9a   :  { %2196 = vrcp.f32 %v1336_v8 }
 0xa9b   :  { %2012 = vmatmul.msk.f32.gmra.mxu3 %vm438_vm9, %v1368_v9 }
 0xaa0   :  { %v2197_v11 = vpop.eup %2196 }
 0xaa1   :  { %v1354_v12 = vpop.xlane.xlu0 %1353  ;;  %v1364_v14 = vmul.f32 %v2197_v11, %v2183_v48  ;;  %v2111_v11 = vld [vmem:[%s2980_s13 + $0x1] ss:$0 sm:$0xff]  ;;  %s1915_s13 = sshll.u32 %s2242_s12, 4  ;;  %s1916_s13 = int_to_ptr.vmem [resolvable:$true] %s1915_s13 }
 0xaa2   :  { %2198 = vrcp.f32 %v1354_v12  ;;  %v2048_v12 = vld [vmem:[%s2983_s16 + $0xf8] sm:$0xff] }
 0xaa3   :  { %2008 = vmatmul.msk.f32.gmra.mxu1 %vm438_vm9, %v1364_v14  ;;  %v2047_v14 = vld [vmem:[%s2983_s16 + $0xf0] sm:$0xff]  ;;  %1755 = vmatpush.msra.mxu2 %v2048_v12 }
 0xaa5   :  { %1756 = vmatpush.msra.mxu2 %v2047_v14 }
 0xaa8   :  { %v2199_v32 = vpop.eup %2198 }
 0xaa9   :  { %v1370_v15 = vmul.f32 %v2199_v32, %v2185_v55 }
 0xaab   :  { %2014 = vmatmul.msk.f32.gmra.mxu0 %vm438_vm9, %v1370_v15  ;;  %2016 = vmatmul.msk.f32.vlgmr.msrb.gmra.mxu1 %vm297_vm8, %v1394_v16  ;;  %v2046_v15 = vld [vmem:[%s2983_s16 + $0xe8] sm:$0xff] }
 0xaac   :  { %1757 = vmatpush.msra.mxu2 %v2046_v15 }
 0xb04   :  { %v1423_v21 = vpop.f32.mrf.mxu2 }
 0xb05   :  { %v1452_v22 = vpop.f32.mrf.mxu3  ;;  %2018 = vmatmul.msk.f32.vlgmr.msrb.gmra.mxu2 %vm297_vm8, %v1423_v21 }
 0xb06   :  { %2020 = vmatmul.msk.f32.vlgmr.msrb.gmra.mxu3 %vm297_vm8, %v1452_v22 }
 0xb0c   :  { %v1426_v23 = vpop.f32.mrf.mxu2 }
 0xb0d   :  { %2019 = vmatmul.msk.f32.gmra.mxu2 %vm297_vm8, %v1426_v23 }
 0xb0e   :  { %v1481_v24 = vpop.f32.mrf.mxu0 }
 0xb0f   :  { %2022 = vmatmul.msk.f32.vlgmr.msra.gmra.mxu0 %vm297_vm8, %v1481_v24 }
 0xb1e   :  { %v1455_v25 = vpop.f32.mrf.mxu3 }
 0xb1f   :  { %2021 = vmatmul.msk.f32.gmra.mxu3 %vm297_vm8, %v1455_v25 }
 0xb20   :  { %v1397_v26 = vpop.f32.mrf.mxu1 }
 0xb21   :  { %2017 = vmatmul.msk.f32.gmra.mxu1 %vm297_vm8, %v1397_v26 }
 0xb28   :  { %v1484_v28 = vpop.f32.mrf.mxu0  ;;  %v1512_v30 = vpop.f32.mrf.mxu1 }
 0xb29   :  { %2023 = vmatmul.msk.f32.gmra.mxu0 %vm297_vm8, %v1484_v28  ;;  %v1521_v31 = vadd.f32 %v2109_v29, %v1512_v30 }
 0xb88   :  { %v1546_v33 = vpop.f32.mrf.mxu2 }
 0xb89   :  { %v1552_v34 = vadd.f32 %v1546_v33, %v1521_v31  ;;  %v1577_v35 = vpop.f32.mrf.mxu3  ;;  %v2045_v33 = vld [vmem:[%s2983_s16 + $0xe0] sm:$0xff] }
 0xb8a   :  { %1758 = vmatpush.msra.mxu2 %v2045_v33 }
 0xb8b   :  { %v1583_v36 = vadd.f32 %v1577_v35, %v1552_v34  ;;  %v2044_v34 = vld [vmem:[%s2983_s16 + $0xd8] sm:$0xff]  ;;  %v2043_v35 = vld [vmem:[%s2983_s16 + $0xd0] sm:$0xff] }
 0xb8c   :  { %v1608_v37 = vpop.f32.mrf.mxu0  ;;  %1759 = vmatpush.msra.mxu2 %v2044_v34 }
 0xb8d   :  { %v1614_v38 = vadd.f32 %v1608_v37, %v1583_v36  ;;  %v2042_v36 = vld [vmem:[%s2983_s16 + $0xc8] sm:$0xff]  ;;  %v2041_v37 = vld [vmem:[%s2983_s16 + $0xc0] sm:$0xff] }
 0xb8e   :  { %1760 = vmatpush.msra.mxu2 %v2043_v35 }
 0xb8f   :  { %v1616_v39 = vadd.f32 %v1614_v38, %v2711_v57  ;;  %v2040_v38 = vld [vmem:[%s2983_s16 + $0xb8] sm:$0xff] }
 0xb90   :  { %v1549_v43 = vpop.f32.mrf.mxu2  ;;  %1761 = vmatpush.msra.mxu2 %v2042_v36 }
 0xb91   :  { %v1622_v40 = vsel %vm82_vm0, %v1616_v39, 0.0 }
 0xb92   :  { %1623 = vadd.xlane.f32.xlu2 %v1622_v40  ;;  %1762 = vmatpush.msra.mxu2 %v2041_v37  ;;  %v2038_v40 = vld [vmem:[%s2983_s16 + $0xa8] sm:$0xff] }
 0xb94   :  { %1763 = vmatpush.msra.mxu2 %v2040_v38 }
 0xb9e   :  { %v1515_v41 = vpop.f32.mrf.mxu1 }
 0xb9f   :  { %v1522_v42 = vadd.f32 %v2109_v29, %v1515_v41  ;;  %v2037_v41 = vld [vmem:[%s2983_s16 + $0xa0] sm:$0xff] }
 0xba1   :  { %v1553_v44 = vadd.f32 %v1549_v43, %v1522_v42  ;;  %v2036_v42 = vld [vmem:[%s2983_s16 + $0x98] sm:$0xff]  ;;  %v2035_v43 = vld [vmem:[%s2983_s16 + $0x90] sm:$0xff] }
 0xba2   :  { %v1580_v45 = vpop.f32.mrf.mxu3 }
 0xba3   :  { %v1584_v46 = vadd.f32 %v1580_v45, %v1553_v44  ;;  %v2034_v44 = vld [vmem:[%s2983_s16 + $0x88] sm:$0xff]  ;;  %v2033_v45 = vld [vmem:[%s2983_s16 + $0x80] sm:$0xff] }
 0xba6   :  { %v1611_v47 = vpop.f32.mrf.mxu0 }
 0xba7   :  { %v1615_v48 = vadd.f32 %v1611_v47, %v1584_v46  ;;  %v2112_v46 = vld [vmem:[%s2982_s15 + $0x1] ss:$0 sm:$0xff] }
 0xba9   :  { %v1617_v49 = vadd.f32 %v1615_v48, %v2720_v1  ;;  %v2029_v1 = vld [vmem:[%s2981_s14 + $0x38] sm:$0xff] }
 0xbaa   :  { %1704 = vmatpush.msra.mxu1 %v2029_v1 }
 0xbab   :  { %v1625_v50 = vsel %vm82_vm0, %v1617_v49, 0.0 }
 0xbac   :  { %1626 = vadd.xlane.f32.xlu0 %v1625_v50  ;;  %1705 = vmatpush.msra.mxu1 %v2028_v58 }
 0xbae   :  { %1706 = vmatpush.msra.mxu1 %v2027_v59 }
 0xbb0   :  { %1707 = vmatpush.msra.mxu1 %v2026_v61 }
 0xc05   :  { %v1624_v55 = vpop.xlane.xlu2 %1623 }
 0xc06   :  { %v1628_v13 = vmul.f32 %v1624_v55, %v2376_v10 }
 0xc08   :  { %v1630_v57 = vsub.f32 %v1616_v39, %v1628_v13  ;;  %v2039_v39 = vld [vmem:[%s2983_s16 + $0xb0] sm:$0xff] }
 0xc09   :  { %1764 = vmatpush.msra.mxu2 %v2039_v39 }
 0xc0a   :  { %v1632_v51 = vmul.f32 %v1630_v57, %v1630_v57 }
 0xc0b   :  { %1765 = vmatpush.msra.mxu2 %v2038_v40 }
 0xc0c   :  { %v1634_v52 = vsel %vm82_vm0, %v1632_v51, 0.0 }
 0xc0d   :  { %1635 = vadd.xlane.f32.xlu0 %v1634_v52  ;;  %1766 = vmatpush.msra.mxu2 %v2037_v41 }
 0xc0f   :  { %1767 = vmatpush.msra.mxu2 %v2036_v42 }
 0xc11   :  { %1768 = vmatpush.msra.mxu2 %v2035_v43 }
 0xc13   :  { %1769 = vmatpush.msra.mxu2 %v2034_v44 }
 0xc15   :  { %1770 = vmatpush.msra.mxu2 %v2033_v45 }
 0xc1f   :  { %v1627_v53 = vpop.xlane.xlu0 %1626 }
 0xc20   :  { %v1629_v18 = vmul.f32 %v1627_v53, %v2376_v10 }
 0xc22   :  { %v1631_v54 = vsub.f32 %v1617_v49, %v1629_v18 }
 0xc24   :  { %v1633_v56 = vmul.f32 %v1631_v54, %v1631_v54 }
 0xc26   :  { %v1637_v60 = vsel %vm82_vm0, %v1633_v56, 0.0 }
 0xc27   :  { %1638 = vadd.xlane.f32.xlu0 %v1637_v60 }
 0xc80   :  { %v1636_v62 = vpop.xlane.xlu0 %1635 }
 0xc81   :  { %v1640_v63 = vmul.f32 %v1636_v62, %v2376_v10 }
 0xc83   :  { %v1642_v0 = vadd.f32 1e-12, %v1640_v63 }
 0xc85   :  { %2200 = vrsqrt.f32 %v1642_v0  ;;  %vm1650_vm8 = vweird.f32 %v1642_v0 }
 0xc8b   :  { %v2201_v2 = vpop.eup %2200 }
 0xc8c   :  { %v1645_v3 = vmul.f32 %v2201_v2, %v1642_v0  ;;  %vm1651_vm7 = vweird.f32 %v2201_v2 }
 0xc8d   :  { %vm1652_vm9 = vmor %vm1650_vm8, %vm1651_vm7 }
 0xc8e   :  { %v1646_v4 = vmul.f32 %v2201_v2, %v1645_v3  ;;  %v2113_v3 = vld [vmem:[%s2984_s17 + $0x1] ss:$0 sm:$0xff] }
 0xc90   :  { %v1647_v5 = vmul.f32 0.5, %v1646_v4 }
 0xc92   :  { %v1648_v27 = vsub.f32 1.5, %v1647_v5 }
 0xc94   :  { %v1649_v6 = vmul.f32 %v2201_v2, %v1648_v27 }
 0xc96   :  { %v1653_v8 = vsel %vm1652_vm9, %v2201_v2, %v1649_v6 }
 0xc97   :  { %v1664_v9 = vmul.f32 %v1653_v8, %v1630_v57 }
 0xc99   :  { %v1669_v32 = vmul.f32 %v2110_v7, %v1664_v9 }
 0xc9a   :  { %v1639_v16 = vpop.xlane.xlu0 %1638 }
 0xc9b   :  { %v1641_v17 = vmul.f32 %v1639_v16, %v2376_v10  ;;  %v2873_v19 = vadd.f32 %v2111_v11, %v1669_v32 }
 0xc9d   :  { %v1643_v20 = vadd.f32 1e-12, %v1641_v17  ;;  %2031 = vmatmul.msk.f32.vlgmr.msra.gmra.mxu1 %vm82_vm0, %v2873_v19 }
 0xc9f   :  { %2202 = vrsqrt.f32 %v1643_v20  ;;  %vm1660_vm11 = vweird.f32 %v1643_v20 }
 0xca5   :  { %v2203_v21 = vpop.eup %2202 }
 0xca6   :  { %v1655_v22 = vmul.f32 %v2203_v21, %v1643_v20  ;;  %vm1661_vm10 = vweird.f32 %v2203_v21 }
 0xca7   :  { %vm1662_vm12 = vmor %vm1660_vm11, %vm1661_vm10 }
 0xca8   :  { %v1656_v23 = vmul.f32 %v2203_v21, %v1655_v22 }
 0xcaa   :  { %v1657_v24 = vmul.f32 0.5, %v1656_v23 }
 0xcac   :  { %v1658_v25 = vsub.f32 1.5, %v1657_v24 }
 0xcae   :  { %v1659_v26 = vmul.f32 %v2203_v21, %v1658_v25 }
 0xcb0   :  { %v1663_v28 = vsel %vm1662_vm12, %v2203_v21, %v1659_v26  ;;  %v1846_v26 = vld [vmem:[%s2987_s20 + $0x18] sm:$0xff] }
 0xcb1   :  { %v1665_v29 = vmul.f32 %v1663_v28, %v1631_v54  ;;  %v1845_v28 = vld [vmem:[%s2987_s20 + $0x10] sm:$0xff]  ;;  %1866 = vmatpush.msra.mxu3 %v1846_v26 }
 0xcb3   :  { %v1670_v30 = vmul.f32 %v2110_v7, %v1665_v29  ;;  %1867 = vmatpush.msra.mxu3 %v1845_v28 }
 0xcb5   :  { %v2877_v31 = vadd.f32 %v2111_v11, %v1670_v30  ;;  %v1844_v30 = vld [vmem:[%s2987_s20 + $0x8] sm:$0xff] }
 0xcb6   :  { %1868 = vmatpush.msra.mxu3 %v1844_v30 }
 0xcb7   :  { %2032 = vmatmul.msk.f32.gmra.mxu1 %vm82_vm0, %v2877_v31 }
 0xd1a   :  { %v1709_v47 = vpop.f32.mrf.mxu1 }
 0xd1b   :  { %v1710_v48 = vadd.f32 %v2112_v46, %v1709_v47 }
 0xd1d   :  { %v1715_v49 = vmul.f32 %v1710_v48, %v1710_v48 }
 0xd1f   :  { %v1717_v50 = vmul.f32 %v1715_v49, %v1710_v48 }
 0xd21   :  { %v1719_v55 = vmul.f32 0.044715, %v1717_v50 }
 0xd23   :  { %v1721_v13 = vadd.f32 %v1719_v55, %v1710_v48 }
 0xd25   :  { %v1723_v57 = vmul.f32 0.7978846, %v1721_v13 }
 0xd27   :  { %2204 = vtanh.f32 %v1723_v57  ;;  %v2115_v57 = vld [vmem:[%s2986_s19 + $0x1] ss:$0 sm:$0xff] }
 0xd2d   :  { %v2205_v51 = vpop.eup %2204 }
 0xd2e   :  { %v1727_v52 = vadd.f32 1.0, %v2205_v51 }
 0xd30   :  { %v1729_v53 = vmul.f32 0.5, %v1727_v52 }
 0xd32   :  { %v1731_v18 = vmul.f32 %v1729_v53, %v1710_v48 }
 0xd34   :  { %v1712_v54 = vpop.f32.mrf.mxu1  ;;  %1771 = vmatmul.f32.vlgmr.msra.gmra.mxu2 %v1731_v18 }
 0xd35   :  { %v1713_v56 = vadd.f32 %v2112_v46, %v1712_v54  ;;  %v1875_v54 = vld [vmem:[%s2989_s22] sm:$0x3f]  ;;  %s1917_s22 = sshll.u32 %s2991_s24, 4  ;;  %s1918_s22 = int_to_ptr.hbm [resolvable:$true] %s1917_s22 }
 0xd37   :  { %v1716_v60 = vmul.f32 %v1713_v56, %v1713_v56 }
 0xd39   :  { %v1718_v1 = vmul.f32 %v1716_v60, %v1713_v56 }
 0xd3b   :  { %v1720_v58 = vmul.f32 0.044715, %v1718_v1 }
 0xd3d   :  { %v1722_v59 = vadd.f32 %v1720_v58, %v1713_v56 }
 0xd3f   :  { %v1724_v61 = vmul.f32 0.7978846, %v1722_v59  ;;  %v2117_v59 = vld [vmem:[%s2990_s23] ss:$0 sm:$0xff] }
 0xd41   :  { %2206 = vtanh.f32 %v1724_v61 }
 0xd47   :  { %v2207_v62 = vpop.eup %2206 }
 0xd48   :  { %v1728_v63 = vadd.f32 1.0, %v2207_v62 }
 0xd4a   :  { %v1730_v0 = vmul.f32 0.5, %v1728_v63 }
 0xd4c   :  { %v1732_v2 = vmul.f32 %v1730_v0, %v1713_v56  ;;  %v2116_v56 = vld [vmem:[%s2988_s21] ss:$0 sm:$0xff] }
 0xd4e   :  { %1774 = vmatmul.f32.gmra.mxu2 %v1732_v2 }
 0xdb7   :  { %v1772_v4 = vpop.f32.mrf.mxu2 }
 0xdb8   :  { %v1773_v5 = vadd.f32 %v2113_v3, %v1772_v4 }
 0xdba   :  { %v1778_v27 = vadd.f32 %v1773_v5, %v2873_v19 }
 0xdbc   :  { %v1784_v6 = vsel %vm82_vm0, %v1778_v27, 0.0 }
 0xdbd   :  { %1785 = vadd.xlane.f32.xlu0 %v1784_v6 }
 0xdd1   :  { %v1775_v7 = vpop.f32.mrf.mxu2 }
 0xdd2   :  { %v1776_v8 = vadd.f32 %v2113_v3, %v1775_v7 }
 0xdd4   :  { %v1779_v9 = vadd.f32 %v1776_v8, %v2877_v31  ;;  %v1843_v31 = vld [vmem:[%s2987_s20] sm:$0xff] }
 0xdd5   :  { %1869 = vmatpush.msra.mxu3 %v1843_v31 }
 0xdd6   :  { %v1787_v11 = vsel %vm82_vm0, %v1779_v9, 0.0 }
 0xdd7   :  { %1788 = vadd.xlane.f32.xlu1 %v1787_v11  ;;  %2053 = vmatpush.msk.msrb.mxu3 %vm1884_vm5, %v1875_v54 }
 0xe30   :  { %v1786_v12 = vpop.xlane.xlu0 %1785 }
 0xe31   :  { %v1790_v14 = vmul.f32 %v1786_v12, %v2376_v10 }
 0xe33   :  { %v1792_v32 = vsub.f32 %v1778_v27, %v1790_v14 }
 0xe35   :  { %v1794_v15 = vmul.f32 %v1792_v32, %v1792_v32 }
 0xe37   :  { %v1796_v16 = vsel %vm82_vm0, %v1794_v15, 0.0 }
 0xe38   :  { %1797 = vadd.xlane.f32.xlu0 %v1796_v16 }
 0xe4a   :  { %v1789_v17 = vpop.xlane.xlu1 %1788 }
 0xe4b   :  { %v1791_v19 = vmul.f32 %v1789_v17, %v2376_v10 }
 0xe4d   :  { %v1793_v20 = vsub.f32 %v1779_v9, %v1791_v19 }
 0xe4f   :  { %v1795_v21 = vmul.f32 %v1793_v20, %v1793_v20 }
 0xe51   :  { %v1799_v22 = vsel %vm82_vm0, %v1795_v21, 0.0 }
 0xe52   :  { %1800 = vadd.xlane.f32.xlu1 %v1799_v22 }
 0xeab   :  { %v1798_v23 = vpop.xlane.xlu0 %1797 }
 0xeac   :  { %v1802_v24 = vmul.f32 %v1798_v23, %v2376_v10 }
 0xeae   :  { %v1804_v25 = vadd.f32 1e-12, %v1802_v24 }
 0xeb0   :  { %2208 = vrsqrt.f32 %v1804_v25  ;;  %vm1812_vm14 = vweird.f32 %v1804_v25 }
 0xeb6   :  { %v2209_v29 = vpop.eup %2208 }
 0xeb7   :  { %v1807_v33 = vmul.f32 %v2209_v29, %v1804_v25  ;;  %vm1813_vm13 = vweird.f32 %v2209_v29 }
 0xeb8   :  { %vm1814_vm15 = vmor %vm1812_vm14, %vm1813_vm13 }
 0xeb9   :  { %v1808_v36 = vmul.f32 %v2209_v29, %v1807_v33 }
 0xebb   :  { %v1809_v38 = vmul.f32 0.5, %v1808_v36 }
 0xebd   :  { %v1810_v39 = vsub.f32 1.5, %v1809_v38 }
 0xebf   :  { %v1811_v42 = vmul.f32 %v2209_v29, %v1810_v39 }
 0xec1   :  { %v1815_v45 = vsel %vm1814_vm15, %v2209_v29, %v1811_v42 }
 0xec2   :  { %v1826_v48 = vmul.f32 %v1815_v45, %v1792_v32 }
 0xec5   :  { %v1801_v34 = vpop.xlane.xlu1 %1800 }
 0xec6   :  { %v1803_v35 = vmul.f32 %v1801_v34, %v2376_v10  ;;  %v2114_v10 = vld [vmem:[%s2985_s18 + $0x1] ss:$0 sm:$0xff] }
 0xec7   :  { %v1831_v55 = vmul.f32 %v2114_v10, %v1826_v48 }
 0xec8   :  { %v1805_v37 = vadd.f32 1e-12, %v1803_v35 }
 0xec9   :  { %v1836_v52 = vadd.f32 %v2115_v57, %v1831_v55 }
 0xeca   :  { %2210 = vrsqrt.f32 %v1805_v37  ;;  %vm1822_vm2 = vweird.f32 %v1805_v37 }
 0xed0   :  { %v2211_v40 = vpop.eup %2210 }
 0xed1   :  { %v1817_v41 = vmul.f32 %v2211_v40, %v1805_v37  ;;  %vm1823_vm1 = vweird.f32 %v2211_v40 }
 0xed2   :  { %vm1824_vm3 = vmor %vm1822_vm2, %vm1823_vm1 }
 0xed3   :  { %v1818_v43 = vmul.f32 %v2211_v40, %v1817_v41 }
 0xed5   :  { %v1819_v44 = vmul.f32 0.5, %v1818_v43 }
 0xed7   :  { %v1820_v46 = vsub.f32 1.5, %v1819_v44 }
 0xed9   :  { %v1821_v47 = vmul.f32 %v2211_v40, %v1820_v46 }
 0xedb   :  { %v1825_v49 = vsel %vm1824_vm3, %v2211_v40, %v1821_v47 }
 0xedc   :  { %v1827_v50 = vmul.f32 %v1825_v49, %v1793_v20 }
 0xede   :  { %v1832_v13 = vmul.f32 %v2114_v10, %v1827_v50 }
 0xee0   :  { %v1837_v51 = vadd.f32 %v2115_v57, %v1832_v13 }
 0xee2   :  { %v1839_v53 = vrot.slane %v1837_v51, 7 }
 0xee4   :  { %v1842_v18 = vsel %vm1841_vm4, %v1836_v52, %v1839_v53 }
 0xee5   :  { %2052 = vmatmul.msk.f32.vlgmr.msra.gmra.mxu3 %vm82_vm0, %v1842_v18  ;;  %vm1908_vm0 = vcmask 17408  }
 0xf68   :  { %v1871_v60 = vpop.f32.mrf.mxu3 }
 0xf69   :  { %v1872_v1 = vadd.f32 %v2116_v56, %v1871_v60 }
 0xf6b   :  { %v1874_v58 = vmax.f32 %v1872_v1, 0.0 }
 0xf6d   :  { %2054 = vmatmul.msk.f32.vlgmr.msrb.gmra.mxu3 %vm1880_vm6, %v1874_v58 }
 0xff0   :  { %v1905_v61 = vpop.f32.mrf.mxu3 }
 0xff1   :  { %v1906_v62 = vadd.f32 %v2117_v59, %v1905_v61 }
 0xff3   :  { %1909 = vst.msk [vmem:[#allocation2] sm:$0x3] %vm1908_vm0, %v1906_v62 }
 0xff4   :  { %1920 = dma.vmem_to_hbm [thread:$0]  %s1916_s13, 32, %s1918_s22, [#allocation3]  }
 0xff5   :  { %2236 = dma.done.wait [#allocation3], 32  }
 0xff6   :  { %2237 = vsyncadd [#allocation3], 4294967264 }
 0xff7   :  { %1925 = vsyncpa [#allocation3], 1 }

</bundles_post_ra>
